<compile_context>
chip_gen: v7x
topology: tpu7x:2x2x1
jax: 0.10.0
libtpu: 0.0.40
codegen_flags: <defaults>
</compile_context>

<pallas_src>
import jax
import jax.numpy as jnp
from jax import lax
from jax.experimental import pallas as pl
from jax.experimental.pallas import tpu as pltpu


def _round_up(x, m):
    return ((x + m - 1) // m) * m


def _largest_divisor_leq(n, cap):
    cap = max(1, min(n, int(cap)))
    for d in range(cap, 0, -1):
        if n % d == 0:
            return d
    return 1


def _ifgo_to_ifog(w):
    """Reorder gate blocks along the last axis from PyTorch (i,f,g,o) to (i,f,o,g)."""
    H = w.shape[-1] // 4
    return jnp.concatenate(
        [w[..., : 2 * H], w[..., 3 * H: 4 * H], w[..., 2 * H: 3 * H]], axis=-1)


def lstm_head_kernel(xp_ref, whh_ref, w1_ref, b1_ref, w2_ref, b2_ref, o_ref,
                     h_sc, c_sc):
    """Grid = (batch_tiles [parallel], T_chunks [arbitrary]).

    xp_ref : (T_chunk, B_tile, 4H) bf16   pre-projected inputs (x@W_ih^T + biases)
    whh_ref: (H, 4H) bf16                 recurrent weights (gate order i,f,o,g)
    h_sc/c_sc: (B_tile, H) f32 VMEM scratch carried across T chunks.
    Output (B_tile, C_pad) f32 written only on the last T chunk.
    """
    t_idx = pl.program_id(1)
    n_t = pl.num_programs(1)
    Tc, Bt, G = xp_ref.shape
    H = G // 4

    @pl.when(t_idx == 0)
    def _():
        h_sc[...] = jnp.zeros_like(h_sc)
        c_sc[...] = jnp.zeros_like(c_sc)

    def step(t, carry):
        h, c = carry
        # Only the recurrent matmul remains on the serial path; W_hh^T is indexed
        # straight from VMEM each step (no loop-long vreg hoist).  bf16 x bf16 -> f32.
        gates = xp_ref[t].astype(jnp.float32) + jnp.dot(
            h.astype(jnp.bfloat16), whh_ref[...],
            preferred_element_type=jnp.float32)
        # Gate order (i, f, o, g): one fused sigmoid (tanh identity, single EUP
        # call site) over the first 3H lanes, one tanh over the last H lanes.
        sig = 0.5 * (jnp.tanh(0.5 * gates[:, : 3 * H]) + 1.0)
        i_g = sig[:, 0 * H: 1 * H]
        f_g = sig[:, 1 * H: 2 * H]
        o_g = sig[:, 2 * H: 3 * H]
        g_g = jnp.tanh(gates[:, 3 * H: 4 * H])
        c = f_g * c + i_g * g_g
        h = o_g * jnp.tanh(c)
        return (h, c)

    unroll = Tc if Tc <= 32 else 8
    h, c = lax.fori_loop(0, Tc, step, (h_sc[...], c_sc[...]), unroll=unroll)
    h_sc[...] = h
    c_sc[...] = c

    @pl.when(t_idx == n_t - 1)
    def _():
        # hidden = output[-1]  ->  linear1  ->  linear2   (lane-dense padded tiles)
        z1 = jnp.dot(h, w1_ref[...], preferred_element_type=jnp.float32) + b1_ref[...]
        z2 = jnp.dot(z1, w2_ref[...], preferred_element_type=jnp.float32) + b2_ref[...]
        o_ref[...] = z2.astype(o_ref.dtype)


def stack_overflow_lstm_forward(x_tokens, params, *, t_chunk=None, b_tile=16):
    """x_tokens: (B, T) int32 token ids. Returns (B, num_classes) float32."""
    emb = params["embedding"]                        # (V, E)
    wih_t = _ifgo_to_ifog(params["wih_t"])           # (E, 4H)  reordered to i,f,o,g
    whh_t = _ifgo_to_ifog(params["whh_t"])           # (H, 4H)
    bias = _ifgo_to_ifog(params["bias"])             # (1, 4H)  == b_ih + b_hh
    w1_t, b1 = params["w1_t"], params["b1"]          # (H, E), (1, E)
    w2_t, b2 = params["w2_t"], params["b2"]          # (E, C), (1, C)

    B, T = x_tokens.shape
    E = emb.shape[1]
    H = whh_t.shape[0]
    C = w2_t.shape[1]
    assert H % 128 == 0, "demo requires lane-aligned hidden size (gate slices)"

    # Batch tile: multiple of 16 sublanes (bf16 packing of x_proj blocks).
    b_tile = max(16, _round_up(b_tile, 16))
    B_pad = _round_up(B, b_tile)
    n_b = B_pad // b_tile
    E_pad = _round_up(E, 128)
    C_pad = _round_up(C, 128)

    # Embedding lookup (gather glue, plain JAX) == nn.Embedding.
    x_emb = jnp.take(emb, x_tokens, axis=0)          # (B, T, E)

    # Hoisted input projection: one large GEMM over all timesteps, written directly
    # time-major (T, B, 4H).  Default MXU precision; streamed to the kernel as bf16.
    x_proj = jnp.einsum("bte,eg->tbg", x_emb, wih_t,
                        preferred_element_type=jnp.float32) + bias
    x_proj = x_proj.astype(jnp.bfloat16)
    if B_pad != B:
        x_proj = jnp.pad(x_proj, ((0, 0), (0, B_pad - B), (0, 0)))

    whh_bf16 = whh_t.astype(jnp.bfloat16)

    # Lane-dense head: zero-pad E -> E_pad and C -> C_pad (math stays exact).
    w1_p = jnp.pad(w1_t, ((0, 0), (0, E_pad - E)))
    b1_p = jnp.pad(b1, ((0, 0), (0, E_pad - E)))
    w2_p = jnp.pad(w2_t, ((0, E_pad - E), (0, C_pad - C)))
    b2_p = jnp.pad(b2, ((0, 0), (0, C_pad - C)))

    # T-chunk size: largest divisor of T keeping each x_proj block ~<= 2 MiB.
    budget = (2 * 1024 * 1024) // max(1, b_tile * 4 * H * 2)
    if t_chunk is None:
        t_chunk = _largest_divisor_leq(T, budget)
    else:
        t_chunk = _largest_divisor_leq(T, min(t_chunk, budget))
    n_t = T // t_chunk

    out = pl.pallas_call(
        lstm_head_kernel,
        out_shape=jax.ShapeDtypeStruct((B_pad, C_pad), jnp.float32),
        grid=(n_b, n_t),
        in_specs=[
            pl.BlockSpec((t_chunk, b_tile, 4 * H), lambda b, t: (t, b, 0)),  # x_proj
            pl.BlockSpec((H, 4 * H), lambda b, t: (0, 0)),                   # W_hh^T
            pl.BlockSpec((H, E_pad), lambda b, t: (0, 0)),                   # W1^T
            pl.BlockSpec((1, E_pad), lambda b, t: (0, 0)),                   # b1
            pl.BlockSpec((E_pad, C_pad), lambda b, t: (0, 0)),               # W2^T
            pl.BlockSpec((1, C_pad), lambda b, t: (0, 0)),                   # b2
        ],
        out_specs=pl.BlockSpec((b_tile, C_pad), lambda b, t: (b, 0)),
        scratch_shapes=[
            pltpu.VMEM((b_tile, H), jnp.float32),    # h carried across T chunks
            pltpu.VMEM((b_tile, H), jnp.float32),    # c carried across T chunks
        ],
        compiler_params=pltpu.CompilerParams(
            dimension_semantics=("parallel", "arbitrary"),
            vmem_limit_bytes=32 * 1024 * 1024,
        ),
    )(x_proj, whh_bf16, w1_p, b1_p, w2_p, b2_p)

    return out[:B, :C]


def reference_forward(x_tokens, params):
    """Pure-JAX reference matching the PyTorch module semantics (default precision)."""
    emb = jnp.take(params["embedding"], x_tokens, axis=0)    # (B, T, E)
    x = jnp.transpose(emb, (1, 0, 2))                        # (T, B, E) == permute(1,0,2)
    T, B, _ = x.shape
    H = params["whh_t"].shape[0]
    h = jnp.zeros((B, H), jnp.float32)
    c = jnp.zeros((B, H), jnp.float32)

    def step(carry, x_t):
        h, c = carry
        gates = (jnp.dot(x_t, params["wih_t"])
                 + jnp.dot(h, params["whh_t"])
                 + params["bias"])
        i = jax.nn.sigmoid(gates[:, 0 * H:1 * H])
        f = jax.nn.sigmoid(gates[:, 1 * H:2 * H])
        g = jnp.tanh(gates[:, 2 * H:3 * H])
        o = jax.nn.sigmoid(gates[:, 3 * H:4 * H])
        c = f * c + i * g
        h = o * jnp.tanh(c)
        return (h, c), None

    (h, c), _ = jax.lax.scan(step, (h, c), x)
    z1 = jnp.dot(h, params["w1_t"]) + params["b1"]
    z2 = jnp.dot(z1, params["w2_t"]) + params["b2"]
    return z2


def make_params(key, num_classes, embed_size, hidden_size):
    ks = jax.random.split(key, 8)
    s = 0.1
    return {
        "embedding": s * jax.random.normal(ks[0], (num_classes, embed_size), jnp.float32),
        # stored pre-transposed in PyTorch gate order (i,f,g,o): (E, 4H), (H, 4H)
        "wih_t": s * jax.random.normal(ks[1], (embed_size, 4 * hidden_size), jnp.float32),
        "whh_t": s * jax.random.normal(ks[2], (hidden_size, 4 * hidden_size), jnp.float32),
        # combined bias b_ih + b_hh, kept 2D (1, 4H) for TPU layout
        "bias": s * jax.random.normal(ks[3], (1, 4 * hidden_size), jnp.float32),
        "w1_t": s * jax.random.normal(ks[4], (hidden_size, embed_size), jnp.float32),
        "b1": s * jax.random.normal(ks[5], (1, embed_size), jnp.float32),
        "w2_t": s * jax.random.normal(ks[6], (embed_size, num_classes), jnp.float32),
        "b2": s * jax.random.normal(ks[7], (1, num_classes), jnp.float32),
    }


if __name__ == "__main__":
    # Small, layout-friendly shapes consistent with the module:
    # B multiple of 16 (bf16 sublane packing), H multiple of 128 (lane-aligned gates).
    # b_tile=16, t_chunk=8 -> grid (2, 2): exercises batch tiling, T chunking and the
    # pl.when init/finalize paths.
    num_classes, embed_size, hidden_size = 16, 64, 128
    B, T = 32, 16

    key = jax.random.PRNGKey(0)
    k_tok, k_par = jax.random.split(key)
    params = make_params(k_par, num_classes, embed_size, hidden_size)
    x_tokens = jax.random.randint(k_tok, (B, T), 0, num_classes, dtype=jnp.int32)

    out = stack_overflow_lstm_forward(x_tokens, params, t_chunk=8, b_tile=16)
    out = jax.block_until_ready(out)

    ref = jax.block_until_ready(reference_forward(x_tokens, params))
    assert out.shape == (B, num_classes)
    # The kernel streams x_proj / W_hh as bf16 (same single-pass MXU math as JAX's
    # default f32 matmul precision, plus bf16 storage rounding), so use 1e-2 tol.
    assert jnp.allclose(out, ref, atol=1e-2, rtol=1e-2), "mismatch vs JAX reference"

    print("KERNEL_OK")
</pallas_src>

<mosaic_0001>
module attributes {stable_mosaic.version = 11 : i64} {
  func.func @lstm_head_kernel(%arg0: i32, %arg1: i32, %arg2: memref<8x16x512xbf16, #tpu.memory_space<vmem>>, %arg3: memref<128x512xbf16, #tpu.memory_space<vmem>>, %arg4: memref<128x128xf32, #tpu.memory_space<vmem>>, %arg5: memref<1x128xf32, #tpu.memory_space<vmem>>, %arg6: memref<128x128xf32, #tpu.memory_space<vmem>>, %arg7: memref<1x128xf32, #tpu.memory_space<vmem>>, %arg8: memref<16x128xf32, #tpu.memory_space<vmem>>, %arg9: memref<16x128xf32, #tpu.memory_space<vmem>>, %arg10: memref<16x128xf32, #tpu.memory_space<vmem>>) attributes {dimension_semantics = [#tpu.dimension_semantics<parallel>, #tpu.dimension_semantics<arbitrary>], iteration_bounds = array<i64: 2, 2>, scalar_prefetch = 0 : i64, scratch_operands = 2 : i64, tpu.core_type = #tpu.core_type<tc>, window_params = [{transform_indices = @transform_0, window_bounds = array<i64: 8, 16, 512>}, {pipeline_mode = #tpu.pipeline_mode<synchronous>, transform_indices = @transform_1, window_bounds = array<i64: 128, 512>}, {pipeline_mode = #tpu.pipeline_mode<synchronous>, transform_indices = @transform_2, window_bounds = array<i64: 128, 128>}, {pipeline_mode = #tpu.pipeline_mode<synchronous>, transform_indices = @transform_3, window_bounds = array<i64: 1, 128>}, {pipeline_mode = #tpu.pipeline_mode<synchronous>, transform_indices = @transform_4, window_bounds = array<i64: 128, 128>}, {pipeline_mode = #tpu.pipeline_mode<synchronous>, transform_indices = @transform_5, window_bounds = array<i64: 1, 128>}, {transform_indices = @transform_6, window_bounds = array<i64: 16, 128>}]} {
    %c0_i32 = arith.constant 0 : i32
    %0 = arith.cmpi eq, %arg1, %c0_i32 : i32
    %1 = arith.extui %0 : i1 to i32
    %c0_i32_0 = arith.constant 0 : i32
    %2 = arith.cmpi ne, %1, %c0_i32_0 : i32
    scf.if %2 {
      %cst_74 = arith.constant 0.000000e+00 : f32
      %218 = vector.broadcast %cst_74 : f32 to vector<16x128xf32>
      %c0_75 = arith.constant 0 : index
      %c0_76 = arith.constant 0 : index
      %219 = vector.load %arg9[%c0_75, %c0_76] : memref<16x128xf32, #tpu.memory_space<vmem>>, vector<16x128xf32>
      tpu.vector_store %arg9[%c0_75, %c0_76], %218 {strides = array<i32>} : memref<16x128xf32, #tpu.memory_space<vmem>>, vector<16x128xf32>,
      %cst_77 = arith.constant 0.000000e+00 : f32
      %220 = vector.broadcast %cst_77 : f32 to vector<16x128xf32>
      %c0_78 = arith.constant 0 : index
      %c0_79 = arith.constant 0 : index
      %221 = vector.load %arg10[%c0_78, %c0_79] : memref<16x128xf32, #tpu.memory_space<vmem>>, vector<16x128xf32>
      tpu.vector_store %arg10[%c0_78, %c0_79], %220 {strides = array<i32>} : memref<16x128xf32, #tpu.memory_space<vmem>>, vector<16x128xf32>,
    } else {
    }
    %c0 = arith.constant 0 : index
    %c0_1 = arith.constant 0 : index
    %3 = vector.load %arg9[%c0, %c0_1] : memref<16x128xf32, #tpu.memory_space<vmem>>, vector<16x128xf32>
    %c0_2 = arith.constant 0 : index
    %c0_3 = arith.constant 0 : index
    %4 = vector.load %arg10[%c0_2, %c0_3] : memref<16x128xf32, #tpu.memory_space<vmem>>, vector<16x128xf32>
    %c0_i32_4 = arith.constant 0 : i32
    %5 = arith.index_cast %c0_i32_4 : i32 to index
    %c0_5 = arith.constant 0 : index
    %c0_6 = arith.constant 0 : index
    %6 = vector.load %arg2[%5, %c0_5, %c0_6] : memref<8x16x512xbf16, #tpu.memory_space<vmem>>, vector<1x16x512xbf16>
    %7 = vector.shape_cast %6 : vector<1x16x512xbf16> to vector<16x512xbf16>
    %8 = arith.extf %7 : vector<16x512xbf16> to vector<16x512xf32>
    %9 = arith.truncf %3 : vector<16x128xf32> to vector<16x128xbf16>
    %c0_7 = arith.constant 0 : index
    %c0_8 = arith.constant 0 : index
    %10 = vector.load %arg3[%c0_7, %c0_8] : memref<128x512xbf16, #tpu.memory_space<vmem>>, vector<128x512xbf16>
    %cst = arith.constant dense<0.000000e+00> : vector<16x512xf32>
    %11 = tpu.matmul %9, %10, %cst {dimension_numbers = #tpu.dot_dimension_numbers<[1], [0], [0], [1], [0, 0, 1, 1], [], []>} : vector<16x128xbf16>, vector<128x512xbf16>, vector<16x512xf32> -> vector<16x512xf32>
    %12 = arith.addf %8, %11 : vector<16x512xf32>
    %13 = vector.extract_strided_slice %12 {offsets = [0, 0], sizes = [16, 384], strides = [1, 1]} : vector<16x512xf32> to vector<16x384xf32>
    %cst_9 = arith.constant 5.000000e-01 : f32
    %14 = vector.broadcast %cst_9 : f32 to vector<16x384xf32>
    %15 = arith.mulf %14, %13 : vector<16x384xf32>
    %16 = math.tanh %15 : vector<16x384xf32>
    %cst_10 = arith.constant 1.000000e+00 : f32
    %17 = vector.broadcast %cst_10 : f32 to vector<16x384xf32>
    %18 = arith.addf %16, %17 : vector<16x384xf32>
    %cst_11 = arith.constant 5.000000e-01 : f32
    %19 = vector.broadcast %cst_11 : f32 to vector<16x384xf32>
    %20 = arith.mulf %19, %18 : vector<16x384xf32>
    %21 = vector.extract_strided_slice %20 {offsets = [0, 0], sizes = [16, 128], strides = [1, 1]} : vector<16x384xf32> to vector<16x128xf32>
    %22 = vector.extract_strided_slice %20 {offsets = [0, 128], sizes = [16, 128], strides = [1, 1]} : vector<16x384xf32> to vector<16x128xf32>
    %23 = vector.extract_strided_slice %20 {offsets = [0, 256], sizes = [16, 128], strides = [1, 1]} : vector<16x384xf32> to vector<16x128xf32>
    %24 = vector.extract_strided_slice %12 {offsets = [0, 384], sizes = [16, 128], strides = [1, 1]} : vector<16x512xf32> to vector<16x128xf32>
    %25 = math.tanh %24 : vector<16x128xf32>
    %26 = arith.mulf %22, %4 : vector<16x128xf32>
    %27 = arith.mulf %21, %25 : vector<16x128xf32>
    %28 = arith.addf %26, %27 : vector<16x128xf32>
    %29 = math.tanh %28 : vector<16x128xf32>
    %30 = arith.mulf %23, %29 : vector<16x128xf32>
    %c1_i32 = arith.constant 1 : i32
    %31 = arith.index_cast %c1_i32 : i32 to index
    %c0_12 = arith.constant 0 : index
    %c0_13 = arith.constant 0 : index
    %32 = vector.load %arg2[%31, %c0_12, %c0_13] : memref<8x16x512xbf16, #tpu.memory_space<vmem>>, vector<1x16x512xbf16>
    %33 = vector.shape_cast %32 : vector<1x16x512xbf16> to vector<16x512xbf16>
    %34 = arith.extf %33 : vector<16x512xbf16> to vector<16x512xf32>
    %35 = arith.truncf %30 : vector<16x128xf32> to vector<16x128xbf16>
    %c0_14 = arith.constant 0 : index
    %c0_15 = arith.constant 0 : index
    %36 = vector.load %arg3[%c0_14, %c0_15] : memref<128x512xbf16, #tpu.memory_space<vmem>>, vector<128x512xbf16>
    %cst_16 = arith.constant dense<0.000000e+00> : vector<16x512xf32>
    %37 = tpu.matmul %35, %36, %cst_16 {dimension_numbers = #tpu.dot_dimension_numbers<[1], [0], [0], [1], [0, 0, 1, 1], [], []>} : vector<16x128xbf16>, vector<128x512xbf16>, vector<16x512xf32> -> vector<16x512xf32>
    %38 = arith.addf %34, %37 : vector<16x512xf32>
    %39 = vector.extract_strided_slice %38 {offsets = [0, 0], sizes = [16, 384], strides = [1, 1]} : vector<16x512xf32> to vector<16x384xf32>
    %cst_17 = arith.constant 5.000000e-01 : f32
    %40 = vector.broadcast %cst_17 : f32 to vector<16x384xf32>
    %41 = arith.mulf %40, %39 : vector<16x384xf32>
    %42 = math.tanh %41 : vector<16x384xf32>
    %cst_18 = arith.constant 1.000000e+00 : f32
    %43 = vector.broadcast %cst_18 : f32 to vector<16x384xf32>
    %44 = arith.addf %42, %43 : vector<16x384xf32>
    %cst_19 = arith.constant 5.000000e-01 : f32
    %45 = vector.broadcast %cst_19 : f32 to vector<16x384xf32>
    %46 = arith.mulf %45, %44 : vector<16x384xf32>
    %47 = vector.extract_strided_slice %46 {offsets = [0, 0], sizes = [16, 128], strides = [1, 1]} : vector<16x384xf32> to vector<16x128xf32>
    %48 = vector.extract_strided_slice %46 {offsets = [0, 128], sizes = [16, 128], strides = [1, 1]} : vector<16x384xf32> to vector<16x128xf32>
    %49 = vector.extract_strided_slice %46 {offsets = [0, 256], sizes = [16, 128], strides = [1, 1]} : vector<16x384xf32> to vector<16x128xf32>
    %50 = vector.extract_strided_slice %38 {offsets = [0, 384], sizes = [16, 128], strides = [1, 1]} : vector<16x512xf32> to vector<16x128xf32>
    %51 = math.tanh %50 : vector<16x128xf32>
    %52 = arith.mulf %48, %28 : vector<16x128xf32>
    %53 = arith.mulf %47, %51 : vector<16x128xf32>
    %54 = arith.addf %52, %53 : vector<16x128xf32>
    %55 = math.tanh %54 : vector<16x128xf32>
    %56 = arith.mulf %49, %55 : vector<16x128xf32>
    %c2_i32 = arith.constant 2 : i32
    %57 = arith.index_cast %c2_i32 : i32 to index
    %c0_20 = arith.constant 0 : index
    %c0_21 = arith.constant 0 : index
    %58 = vector.load %arg2[%57, %c0_20, %c0_21] : memref<8x16x512xbf16, #tpu.memory_space<vmem>>, vector<1x16x512xbf16>
    %59 = vector.shape_cast %58 : vector<1x16x512xbf16> to vector<16x512xbf16>
    %60 = arith.extf %59 : vector<16x512xbf16> to vector<16x512xf32>
    %61 = arith.truncf %56 : vector<16x128xf32> to vector<16x128xbf16>
    %c0_22 = arith.constant 0 : index
    %c0_23 = arith.constant 0 : index
    %62 = vector.load %arg3[%c0_22, %c0_23] : memref<128x512xbf16, #tpu.memory_space<vmem>>, vector<128x512xbf16>
    %cst_24 = arith.constant dense<0.000000e+00> : vector<16x512xf32>
    %63 = tpu.matmul %61, %62, %cst_24 {dimension_numbers = #tpu.dot_dimension_numbers<[1], [0], [0], [1], [0, 0, 1, 1], [], []>} : vector<16x128xbf16>, vector<128x512xbf16>, vector<16x512xf32> -> vector<16x512xf32>
    %64 = arith.addf %60, %63 : vector<16x512xf32>
    %65 = vector.extract_strided_slice %64 {offsets = [0, 0], sizes = [16, 384], strides = [1, 1]} : vector<16x512xf32> to vector<16x384xf32>
    %cst_25 = arith.constant 5.000000e-01 : f32
    %66 = vector.broadcast %cst_25 : f32 to vector<16x384xf32>
    %67 = arith.mulf %66, %65 : vector<16x384xf32>
    %68 = math.tanh %67 : vector<16x384xf32>
    %cst_26 = arith.constant 1.000000e+00 : f32
    %69 = vector.broadcast %cst_26 : f32 to vector<16x384xf32>
    %70 = arith.addf %68, %69 : vector<16x384xf32>
    %cst_27 = arith.constant 5.000000e-01 : f32
    %71 = vector.broadcast %cst_27 : f32 to vector<16x384xf32>
    %72 = arith.mulf %71, %70 : vector<16x384xf32>
    %73 = vector.extract_strided_slice %72 {offsets = [0, 0], sizes = [16, 128], strides = [1, 1]} : vector<16x384xf32> to vector<16x128xf32>
    %74 = vector.extract_strided_slice %72 {offsets = [0, 128], sizes = [16, 128], strides = [1, 1]} : vector<16x384xf32> to vector<16x128xf32>
    %75 = vector.extract_strided_slice %72 {offsets = [0, 256], sizes = [16, 128], strides = [1, 1]} : vector<16x384xf32> to vector<16x128xf32>
    %76 = vector.extract_strided_slice %64 {offsets = [0, 384], sizes = [16, 128], strides = [1, 1]} : vector<16x512xf32> to vector<16x128xf32>
    %77 = math.tanh %76 : vector<16x128xf32>
    %78 = arith.mulf %74, %54 : vector<16x128xf32>
    %79 = arith.mulf %73, %77 : vector<16x128xf32>
    %80 = arith.addf %78, %79 : vector<16x128xf32>
    %81 = math.tanh %80 : vector<16x128xf32>
    %82 = arith.mulf %75, %81 : vector<16x128xf32>
    %c3_i32 = arith.constant 3 : i32
    %83 = arith.index_cast %c3_i32 : i32 to index
    %c0_28 = arith.constant 0 : index
    %c0_29 = arith.constant 0 : index
    %84 = vector.load %arg2[%83, %c0_28, %c0_29] : memref<8x16x512xbf16, #tpu.memory_space<vmem>>, vector<1x16x512xbf16>
    %85 = vector.shape_cast %84 : vector<1x16x512xbf16> to vector<16x512xbf16>
    %86 = arith.extf %85 : vector<16x512xbf16> to vector<16x512xf32>
    %87 = arith.truncf %82 : vector<16x128xf32> to vector<16x128xbf16>
    %c0_30 = arith.constant 0 : index
    %c0_31 = arith.constant 0 : index
    %88 = vector.load %arg3[%c0_30, %c0_31] : memref<128x512xbf16, #tpu.memory_space<vmem>>, vector<128x512xbf16>
    %cst_32 = arith.constant dense<0.000000e+00> : vector<16x512xf32>
    %89 = tpu.matmul %87, %88, %cst_32 {dimension_numbers = #tpu.dot_dimension_numbers<[1], [0], [0], [1], [0, 0, 1, 1], [], []>} : vector<16x128xbf16>, vector<128x512xbf16>, vector<16x512xf32> -> vector<16x512xf32>
    %90 = arith.addf %86, %89 : vector<16x512xf32>
    %91 = vector.extract_strided_slice %90 {offsets = [0, 0], sizes = [16, 384], strides = [1, 1]} : vector<16x512xf32> to vector<16x384xf32>
    %cst_33 = arith.constant 5.000000e-01 : f32
    %92 = vector.broadcast %cst_33 : f32 to vector<16x384xf32>
    %93 = arith.mulf %92, %91 : vector<16x384xf32>
    %94 = math.tanh %93 : vector<16x384xf32>
    %cst_34 = arith.constant 1.000000e+00 : f32
    %95 = vector.broadcast %cst_34 : f32 to vector<16x384xf32>
    %96 = arith.addf %94, %95 : vector<16x384xf32>
    %cst_35 = arith.constant 5.000000e-01 : f32
    %97 = vector.broadcast %cst_35 : f32 to vector<16x384xf32>
    %98 = arith.mulf %97, %96 : vector<16x384xf32>
    %99 = vector.extract_strided_slice %98 {offsets = [0, 0], sizes = [16, 128], strides = [1, 1]} : vector<16x384xf32> to vector<16x128xf32>
    %100 = vector.extract_strided_slice %98 {offsets = [0, 128], sizes = [16, 128], strides = [1, 1]} : vector<16x384xf32> to vector<16x128xf32>
    %101 = vector.extract_strided_slice %98 {offsets = [0, 256], sizes = [16, 128], strides = [1, 1]} : vector<16x384xf32> to vector<16x128xf32>
    %102 = vector.extract_strided_slice %90 {offsets = [0, 384], sizes = [16, 128], strides = [1, 1]} : vector<16x512xf32> to vector<16x128xf32>
    %103 = math.tanh %102 : vector<16x128xf32>
    %104 = arith.mulf %100, %80 : vector<16x128xf32>
    %105 = arith.mulf %99, %103 : vector<16x128xf32>
    %106 = arith.addf %104, %105 : vector<16x128xf32>
    %107 = math.tanh %106 : vector<16x128xf32>
    %108 = arith.mulf %101, %107 : vector<16x128xf32>
    %c4_i32 = arith.constant 4 : i32
    %109 = arith.index_cast %c4_i32 : i32 to index
    %c0_36 = arith.constant 0 : index
    %c0_37 = arith.constant 0 : index
    %110 = vector.load %arg2[%109, %c0_36, %c0_37] : memref<8x16x512xbf16, #tpu.memory_space<vmem>>, vector<1x16x512xbf16>
    %111 = vector.shape_cast %110 : vector<1x16x512xbf16> to vector<16x512xbf16>
    %112 = arith.extf %111 : vector<16x512xbf16> to vector<16x512xf32>
    %113 = arith.truncf %108 : vector<16x128xf32> to vector<16x128xbf16>
    %c0_38 = arith.constant 0 : index
    %c0_39 = arith.constant 0 : index
    %114 = vector.load %arg3[%c0_38, %c0_39] : memref<128x512xbf16, #tpu.memory_space<vmem>>, vector<128x512xbf16>
    %cst_40 = arith.constant dense<0.000000e+00> : vector<16x512xf32>
    %115 = tpu.matmul %113, %114, %cst_40 {dimension_numbers = #tpu.dot_dimension_numbers<[1], [0], [0], [1], [0, 0, 1, 1], [], []>} : vector<16x128xbf16>, vector<128x512xbf16>, vector<16x512xf32> -> vector<16x512xf32>
    %116 = arith.addf %112, %115 : vector<16x512xf32>
    %117 = vector.extract_strided_slice %116 {offsets = [0, 0], sizes = [16, 384], strides = [1, 1]} : vector<16x512xf32> to vector<16x384xf32>
    %cst_41 = arith.constant 5.000000e-01 : f32
    %118 = vector.broadcast %cst_41 : f32 to vector<16x384xf32>
    %119 = arith.mulf %118, %117 : vector<16x384xf32>
    %120 = math.tanh %119 : vector<16x384xf32>
    %cst_42 = arith.constant 1.000000e+00 : f32
    %121 = vector.broadcast %cst_42 : f32 to vector<16x384xf32>
    %122 = arith.addf %120, %121 : vector<16x384xf32>
    %cst_43 = arith.constant 5.000000e-01 : f32
    %123 = vector.broadcast %cst_43 : f32 to vector<16x384xf32>
    %124 = arith.mulf %123, %122 : vector<16x384xf32>
    %125 = vector.extract_strided_slice %124 {offsets = [0, 0], sizes = [16, 128], strides = [1, 1]} : vector<16x384xf32> to vector<16x128xf32>
    %126 = vector.extract_strided_slice %124 {offsets = [0, 128], sizes = [16, 128], strides = [1, 1]} : vector<16x384xf32> to vector<16x128xf32>
    %127 = vector.extract_strided_slice %124 {offsets = [0, 256], sizes = [16, 128], strides = [1, 1]} : vector<16x384xf32> to vector<16x128xf32>
    %128 = vector.extract_strided_slice %116 {offsets = [0, 384], sizes = [16, 128], strides = [1, 1]} : vector<16x512xf32> to vector<16x128xf32>
    %129 = math.tanh %128 : vector<16x128xf32>
    %130 = arith.mulf %126, %106 : vector<16x128xf32>
    %131 = arith.mulf %125, %129 : vector<16x128xf32>
    %132 = arith.addf %130, %131 : vector<16x128xf32>
    %133 = math.tanh %132 : vector<16x128xf32>
    %134 = arith.mulf %127, %133 : vector<16x128xf32>
    %c5_i32 = arith.constant 5 : i32
    %135 = arith.index_cast %c5_i32 : i32 to index
    %c0_44 = arith.constant 0 : index
    %c0_45 = arith.constant 0 : index
    %136 = vector.load %arg2[%135, %c0_44, %c0_45] : memref<8x16x512xbf16, #tpu.memory_space<vmem>>, vector<1x16x512xbf16>
    %137 = vector.shape_cast %136 : vector<1x16x512xbf16> to vector<16x512xbf16>
    %138 = arith.extf %137 : vector<16x512xbf16> to vector<16x512xf32>
    %139 = arith.truncf %134 : vector<16x128xf32> to vector<16x128xbf16>
    %c0_46 = arith.constant 0 : index
    %c0_47 = arith.constant 0 : index
    %140 = vector.load %arg3[%c0_46, %c0_47] : memref<128x512xbf16, #tpu.memory_space<vmem>>, vector<128x512xbf16>
    %cst_48 = arith.constant dense<0.000000e+00> : vector<16x512xf32>
    %141 = tpu.matmul %139, %140, %cst_48 {dimension_numbers = #tpu.dot_dimension_numbers<[1], [0], [0], [1], [0, 0, 1, 1], [], []>} : vector<16x128xbf16>, vector<128x512xbf16>, vector<16x512xf32> -> vector<16x512xf32>
    %142 = arith.addf %138, %141 : vector<16x512xf32>
    %143 = vector.extract_strided_slice %142 {offsets = [0, 0], sizes = [16, 384], strides = [1, 1]} : vector<16x512xf32> to vector<16x384xf32>
    %cst_49 = arith.constant 5.000000e-01 : f32
    %144 = vector.broadcast %cst_49 : f32 to vector<16x384xf32>
    %145 = arith.mulf %144, %143 : vector<16x384xf32>
    %146 = math.tanh %145 : vector<16x384xf32>
    %cst_50 = arith.constant 1.000000e+00 : f32
    %147 = vector.broadcast %cst_50 : f32 to vector<16x384xf32>
    %148 = arith.addf %146, %147 : vector<16x384xf32>
    %cst_51 = arith.constant 5.000000e-01 : f32
    %149 = vector.broadcast %cst_51 : f32 to vector<16x384xf32>
    %150 = arith.mulf %149, %148 : vector<16x384xf32>
    %151 = vector.extract_strided_slice %150 {offsets = [0, 0], sizes = [16, 128], strides = [1, 1]} : vector<16x384xf32> to vector<16x128xf32>
    %152 = vector.extract_strided_slice %150 {offsets = [0, 128], sizes = [16, 128], strides = [1, 1]} : vector<16x384xf32> to vector<16x128xf32>
    %153 = vector.extract_strided_slice %150 {offsets = [0, 256], sizes = [16, 128], strides = [1, 1]} : vector<16x384xf32> to vector<16x128xf32>
    %154 = vector.extract_strided_slice %142 {offsets = [0, 384], sizes = [16, 128], strides = [1, 1]} : vector<16x512xf32> to vector<16x128xf32>
    %155 = math.tanh %154 : vector<16x128xf32>
    %156 = arith.mulf %152, %132 : vector<16x128xf32>
    %157 = arith.mulf %151, %155 : vector<16x128xf32>
    %158 = arith.addf %156, %157 : vector<16x128xf32>
    %159 = math.tanh %158 : vector<16x128xf32>
    %160 = arith.mulf %153, %159 : vector<16x128xf32>
    %c6_i32 = arith.constant 6 : i32
    %161 = arith.index_cast %c6_i32 : i32 to index
    %c0_52 = arith.constant 0 : index
    %c0_53 = arith.constant 0 : index
    %162 = vector.load %arg2[%161, %c0_52, %c0_53] : memref<8x16x512xbf16, #tpu.memory_space<vmem>>, vector<1x16x512xbf16>
    %163 = vector.shape_cast %162 : vector<1x16x512xbf16> to vector<16x512xbf16>
    %164 = arith.extf %163 : vector<16x512xbf16> to vector<16x512xf32>
    %165 = arith.truncf %160 : vector<16x128xf32> to vector<16x128xbf16>
    %c0_54 = arith.constant 0 : index
    %c0_55 = arith.constant 0 : index
    %166 = vector.load %arg3[%c0_54, %c0_55] : memref<128x512xbf16, #tpu.memory_space<vmem>>, vector<128x512xbf16>
    %cst_56 = arith.constant dense<0.000000e+00> : vector<16x512xf32>
    %167 = tpu.matmul %165, %166, %cst_56 {dimension_numbers = #tpu.dot_dimension_numbers<[1], [0], [0], [1], [0, 0, 1, 1], [], []>} : vector<16x128xbf16>, vector<128x512xbf16>, vector<16x512xf32> -> vector<16x512xf32>
    %168 = arith.addf %164, %167 : vector<16x512xf32>
    %169 = vector.extract_strided_slice %168 {offsets = [0, 0], sizes = [16, 384], strides = [1, 1]} : vector<16x512xf32> to vector<16x384xf32>
    %cst_57 = arith.constant 5.000000e-01 : f32
    %170 = vector.broadcast %cst_57 : f32 to vector<16x384xf32>
    %171 = arith.mulf %170, %169 : vector<16x384xf32>
    %172 = math.tanh %171 : vector<16x384xf32>
    %cst_58 = arith.constant 1.000000e+00 : f32
    %173 = vector.broadcast %cst_58 : f32 to vector<16x384xf32>
    %174 = arith.addf %172, %173 : vector<16x384xf32>
    %cst_59 = arith.constant 5.000000e-01 : f32
    %175 = vector.broadcast %cst_59 : f32 to vector<16x384xf32>
    %176 = arith.mulf %175, %174 : vector<16x384xf32>
    %177 = vector.extract_strided_slice %176 {offsets = [0, 0], sizes = [16, 128], strides = [1, 1]} : vector<16x384xf32> to vector<16x128xf32>
    %178 = vector.extract_strided_slice %176 {offsets = [0, 128], sizes = [16, 128], strides = [1, 1]} : vector<16x384xf32> to vector<16x128xf32>
    %179 = vector.extract_strided_slice %176 {offsets = [0, 256], sizes = [16, 128], strides = [1, 1]} : vector<16x384xf32> to vector<16x128xf32>
    %180 = vector.extract_strided_slice %168 {offsets = [0, 384], sizes = [16, 128], strides = [1, 1]} : vector<16x512xf32> to vector<16x128xf32>
    %181 = math.tanh %180 : vector<16x128xf32>
    %182 = arith.mulf %178, %158 : vector<16x128xf32>
    %183 = arith.mulf %177, %181 : vector<16x128xf32>
    %184 = arith.addf %182, %183 : vector<16x128xf32>
    %185 = math.tanh %184 : vector<16x128xf32>
    %186 = arith.mulf %179, %185 : vector<16x128xf32>
    %c7_i32 = arith.constant 7 : i32
    %187 = arith.index_cast %c7_i32 : i32 to index
    %c0_60 = arith.constant 0 : index
    %c0_61 = arith.constant 0 : index
    %188 = vector.load %arg2[%187, %c0_60, %c0_61] : memref<8x16x512xbf16, #tpu.memory_space<vmem>>, vector<1x16x512xbf16>
    %189 = vector.shape_cast %188 : vector<1x16x512xbf16> to vector<16x512xbf16>
    %190 = arith.extf %189 : vector<16x512xbf16> to vector<16x512xf32>
    %191 = arith.truncf %186 : vector<16x128xf32> to vector<16x128xbf16>
    %c0_62 = arith.constant 0 : index
    %c0_63 = arith.constant 0 : index
    %192 = vector.load %arg3[%c0_62, %c0_63] : memref<128x512xbf16, #tpu.memory_space<vmem>>, vector<128x512xbf16>
    %cst_64 = arith.constant dense<0.000000e+00> : vector<16x512xf32>
    %193 = tpu.matmul %191, %192, %cst_64 {dimension_numbers = #tpu.dot_dimension_numbers<[1], [0], [0], [1], [0, 0, 1, 1], [], []>} : vector<16x128xbf16>, vector<128x512xbf16>, vector<16x512xf32> -> vector<16x512xf32>
    %194 = arith.addf %190, %193 : vector<16x512xf32>
    %195 = vector.extract_strided_slice %194 {offsets = [0, 0], sizes = [16, 384], strides = [1, 1]} : vector<16x512xf32> to vector<16x384xf32>
    %cst_65 = arith.constant 5.000000e-01 : f32
    %196 = vector.broadcast %cst_65 : f32 to vector<16x384xf32>
    %197 = arith.mulf %196, %195 : vector<16x384xf32>
    %198 = math.tanh %197 : vector<16x384xf32>
    %cst_66 = arith.constant 1.000000e+00 : f32
    %199 = vector.broadcast %cst_66 : f32 to vector<16x384xf32>
    %200 = arith.addf %198, %199 : vector<16x384xf32>
    %cst_67 = arith.constant 5.000000e-01 : f32
    %201 = vector.broadcast %cst_67 : f32 to vector<16x384xf32>
    %202 = arith.mulf %201, %200 : vector<16x384xf32>
    %203 = vector.extract_strided_slice %202 {offsets = [0, 0], sizes = [16, 128], strides = [1, 1]} : vector<16x384xf32> to vector<16x128xf32>
    %204 = vector.extract_strided_slice %202 {offsets = [0, 128], sizes = [16, 128], strides = [1, 1]} : vector<16x384xf32> to vector<16x128xf32>
    %205 = vector.extract_strided_slice %202 {offsets = [0, 256], sizes = [16, 128], strides = [1, 1]} : vector<16x384xf32> to vector<16x128xf32>
    %206 = vector.extract_strided_slice %194 {offsets = [0, 384], sizes = [16, 128], strides = [1, 1]} : vector<16x512xf32> to vector<16x128xf32>
    %207 = math.tanh %206 : vector<16x128xf32>
    %208 = arith.mulf %204, %184 : vector<16x128xf32>
    %209 = arith.mulf %203, %207 : vector<16x128xf32>
    %210 = arith.addf %208, %209 : vector<16x128xf32>
    %211 = math.tanh %210 : vector<16x128xf32>
    %212 = arith.mulf %205, %211 : vector<16x128xf32>
    %c8_i32 = arith.constant 8 : i32
    %c0_68 = arith.constant 0 : index
    %c0_69 = arith.constant 0 : index
    %213 = vector.load %arg9[%c0_68, %c0_69] : memref<16x128xf32, #tpu.memory_space<vmem>>, vector<16x128xf32>
    tpu.vector_store %arg9[%c0_68, %c0_69], %212 {strides = array<i32>} : memref<16x128xf32, #tpu.memory_space<vmem>>, vector<16x128xf32>,
    %c0_70 = arith.constant 0 : index
    %c0_71 = arith.constant 0 : index
    %214 = vector.load %arg10[%c0_70, %c0_71] : memref<16x128xf32, #tpu.memory_space<vmem>>, vector<16x128xf32>
    tpu.vector_store %arg10[%c0_70, %c0_71], %210 {strides = array<i32>} : memref<16x128xf32, #tpu.memory_space<vmem>>, vector<16x128xf32>,
    %c1_i32_72 = arith.constant 1 : i32
    %215 = arith.cmpi eq, %arg1, %c1_i32_72 : i32
    %216 = arith.extui %215 : i1 to i32
    %c0_i32_73 = arith.constant 0 : i32
    %217 = arith.cmpi ne, %216, %c0_i32_73 : i32
    scf.if %217 {
      %c0_74 = arith.constant 0 : index
      %c0_75 = arith.constant 0 : index
      %218 = vector.load %arg4[%c0_74, %c0_75] : memref<128x128xf32, #tpu.memory_space<vmem>>, vector<128x128xf32>
      %cst_76 = arith.constant dense<0.000000e+00> : vector<16x128xf32>
      %219 = tpu.matmul %212, %218, %cst_76 {dimension_numbers = #tpu.dot_dimension_numbers<[1], [0], [0], [1], [0, 0, 1, 1], [], []>} : vector<16x128xf32>, vector<128x128xf32>, vector<16x128xf32> -> vector<16x128xf32>
      %c0_77 = arith.constant 0 : index
      %c0_78 = arith.constant 0 : index
      %220 = vector.load %arg5[%c0_77, %c0_78] : memref<1x128xf32, #tpu.memory_space<vmem>>, vector<1x128xf32>
      %221 = vector.broadcast %220 : vector<1x128xf32> to vector<16x128xf32>
      %222 = arith.addf %219, %221 : vector<16x128xf32>
      %c0_79 = arith.constant 0 : index
      %c0_80 = arith.constant 0 : index
      %223 = vector.load %arg6[%c0_79, %c0_80] : memref<128x128xf32, #tpu.memory_space<vmem>>, vector<128x128xf32>
      %cst_81 = arith.constant dense<0.000000e+00> : vector<16x128xf32>
      %224 = tpu.matmul %222, %223, %cst_81 {dimension_numbers = #tpu.dot_dimension_numbers<[1], [0], [0], [1], [0, 0, 1, 1], [], []>} : vector<16x128xf32>, vector<128x128xf32>, vector<16x128xf32> -> vector<16x128xf32>
      %c0_82 = arith.constant 0 : index
      %c0_83 = arith.constant 0 : index
      %225 = vector.load %arg7[%c0_82, %c0_83] : memref<1x128xf32, #tpu.memory_space<vmem>>, vector<1x128xf32>
      %226 = vector.broadcast %225 : vector<1x128xf32> to vector<16x128xf32>
      %227 = arith.addf %224, %226 : vector<16x128xf32>
      %c0_84 = arith.constant 0 : index
      %c0_85 = arith.constant 0 : index
      %228 = vector.load %arg8[%c0_84, %c0_85] : memref<16x128xf32, #tpu.memory_space<vmem>>, vector<16x128xf32>
      tpu.vector_store %arg8[%c0_84, %c0_85], %227 {strides = array<i32>} : memref<16x128xf32, #tpu.memory_space<vmem>>, vector<16x128xf32>,
    } else {
    }
    return
  }
  func.func @transform_0(%arg0: i32, %arg1: i32) -> (i32, i32, i32) {
    %c0_i32 = arith.constant 0 : i32
    %c0_i32_0 = arith.constant 0 : i32
    return %arg1, %arg0, %c0_i32 : i32, i32, i32
  }
  func.func @transform_1(%arg0: i32, %arg1: i32) -> (i32, i32) {
    %c0_i32 = arith.constant 0 : i32
    %c0_i32_0 = arith.constant 0 : i32
    %c0_i32_1 = arith.constant 0 : i32
    return %c0_i32, %c0_i32_0 : i32, i32
  }
  func.func @transform_2(%arg0: i32, %arg1: i32) -> (i32, i32) {
    %c0_i32 = arith.constant 0 : i32
    %c0_i32_0 = arith.constant 0 : i32
    %c0_i32_1 = arith.constant 0 : i32
    return %c0_i32, %c0_i32_0 : i32, i32
  }
  func.func @transform_3(%arg0: i32, %arg1: i32) -> (i32, i32) {
    %c0_i32 = arith.constant 0 : i32
    %c0_i32_0 = arith.constant 0 : i32
    %c0_i32_1 = arith.constant 0 : i32
    return %c0_i32, %c0_i32_0 : i32, i32
  }
  func.func @transform_4(%arg0: i32, %arg1: i32) -> (i32, i32) {
    %c0_i32 = arith.constant 0 : i32
    %c0_i32_0 = arith.constant 0 : i32
    %c0_i32_1 = arith.constant 0 : i32
    return %c0_i32, %c0_i32_0 : i32, i32
  }
  func.func @transform_5(%arg0: i32, %arg1: i32) -> (i32, i32) {
    %c0_i32 = arith.constant 0 : i32
    %c0_i32_0 = arith.constant 0 : i32
    %c0_i32_1 = arith.constant 0 : i32
    return %c0_i32, %c0_i32_0 : i32, i32
  }
  func.func @transform_6(%arg0: i32, %arg1: i32) -> (i32, i32) {
    %c0_i32 = arith.constant 0 : i32
    %c0_i32_0 = arith.constant 0 : i32
    return %arg0, %c0_i32 : i32, i32
  }
}

</mosaic_0001>

<bundles_post_ra>
// kernel: tpu_custom_call.1
= control target key start
LH: loop header
LB: loop body
LE: loop exit
PB: predicated region body
PF: predicated region fallthrough
CT: control target
= control target key end

     0   :  { %s3777_s0 = inlined_call_operand.hbm [shape: bf16[16,32,512], index: 0, kind: input, shape index: {}]   ;;  %s3778_s1 = inlined_call_operand.hbm [shape: bf16[128,512], index: 1, kind: input, shape index: {}]   ;;  %s3779_s2 = inlined_call_operand.hbm [shape: f32[128,128], index: 2, kind: input, shape index: {}]   ;;  %s3780_s3 = inlined_call_operand.vmem [shape: f32[1,128], index: 3, kind: input, shape index: {}]   ;;  %s3781_s4 = inlined_call_operand.hbm [shape: f32[128,128], index: 4, kind: input, shape index: {}]   ;;  %s3782_s5 = inlined_call_operand.vmem [shape: f32[1,128], index: 5, kind: input, shape index: {}]   ;;  %s3783_s6 = inlined_call_operand.hbm [shape: f32[32,128], index: 6, kind: output, shape index: {}]  }
   0x1   :  { %3798 = sst [smem:[#allocation29_spill]] %s3778_s1 }
   0x2   :  { %3799 = sst [smem:[#allocation30_spill]] %s3782_s5 }
   0x3   :  { %3800 = sst [smem:[#allocation31_spill]] %s3783_s6 }
   0x4   :  { %11 = vsyncpa [#allocation5], 0 }
   0x5   :  { %13 = vsyncpa [#allocation5 + $0x1], 0 }
   0x6   :  { %14 = vsyncpa [#allocation8], 0 }
   0x7   :  { %15 = vsyncpa [#allocation11], 0 }
   0x8   :  { %16 = vsyncpa [#allocation6], 0 }
   0x9   :  { %18 = vsyncpa [#allocation6 + $0x1], 0  ;;  %s2973_s21 = smov 0   ;;  %s2975_s22 = smov 0  }
   0xa   :  { %s2977_s23 = smov 0   ;;  %s2979_s24 = smov 0  }
   0xb   :  { %s2981_s25 = smov 0   ;;  %s2983_s26 = smov 0  }
   0xc   :  { %s2985_s27 = smov 0   ;;  %s2987_s28 = smov 0  }
   0xd   :  { %s2989_s29 = smov 0   ;;  %s2991_s30 = smov 0  }
   0xe   :  { %s2993_s7 = smov 0  }
   0xf LB: > { %3801 = sst [smem:[#allocation20_spill]] %s2878_s21  ;;  %s2052_s8 = sadd.s32 4294967295, %s2918_s7   ;;  %s2918_s7 = sphi %s2993_s7, %s24_s7   ;;  %s2914_s30 = sphi %s2991_s30, %s3844_s30   ;;  %s2910_s29 = sphi %s2989_s29, %s3843_s29   ;;  %s2906_s28 = sphi %s2987_s28, %s3842_s28   ;;  %s2902_s27 = sphi %s2985_s27, %s3841_s27   ;;  %s2898_s26 = sphi %s2983_s26, %s3840_s26   ;;  %s2894_s25 = sphi %s2981_s25, %s3839_s25   ;;  %s2890_s24 = sphi %s2979_s24, %s3838_s24   ;;  %s2886_s23 = sphi %s2977_s23, %s3832_s23   ;;  %s2882_s22 = sphi %s2975_s22, %s3837_s22   ;;  %s2878_s21 = sphi %s2973_s21, %s3836_s21  }
  0x10   : > { %3802 = sst [smem:[#allocation21_spill]] %s2886_s23  ;;  %s2053_s9 = sadd.s32 4294967294, %s2918_s7  }
  0x11   : > { %3803 = sst [smem:[#allocation22_spill]] %s2906_s28  ;;  %s33_s10 = sadd.s32 1, %s2910_s29 }
  0x12   : > { %s36_s11 = sadd.s32 1, %s2914_s30  ;;  %p34_p0 = scmp.ge.s32.totalorder %s33_s10, 2 }
  0x13   : > { %s45_s12 = sadd.s32 1, %s2898_s26  ;;  %p52_p1 = scmp.ne.s32.totalorder %s2898_s26, %s2894_s25 }
  0x14   : > { %p53_p2 = scmp.eq.s32.totalorder %s2918_s7, 0  ;;  %s3846_s10 = smov (%p34_p0, %s33_s10), 0 }
  0x15   : > { %3804 = sst [smem:[#allocation23_spill]] %s3846_s10  ;;  %s3848_s11 = smov (!%p34_p0, %s36_s11), %s2914_s30 }
  0x16   : > { %s40_s13 = ssub.s32 %s2910_s29, %s3846_s10  ;;  %p3039_p3 = por %p53_p2, %p52_p1 }
  0x17   : > { %p38_p4 = scmp.ge.s32.totalorder %s3848_s11, 2  ;;  %p58_p5 = scmp.ne.s32.totalorder %s2894_s25, %s2890_s24 }
  0x18   : > { %s3805_s14 = scalar_select %p3039_p3, 1, 0 }
  0x19   : > { %p3044_p6 = scmp.eq.s32.totalorder %s2052_s8, 0  ;;  %s176_s16 = sadd.s32 1, %s2886_s23 }
  0x1a   : > { %s3850_s11 = smov (%p38_p4, %s3848_s11), 0  ;;  %p186_p8 = scmp.ne.s32.totalorder %s2886_s23, %s2882_s22 }
  0x1b   : > { %s3806_s15 = scalar_select %p3044_p6, 1, 0 }
  0x1c   : > { %3807 = sst [smem:[#allocation24_spill]] %s3850_s11  ;;  %p3053_p7 = por %p3044_p6, %p58_p5 }
  0x1d   : > { %s41_s18 = ssub.s32 %s2914_s30, %s3850_s11  ;;  %p187_p9 = scmp.eq.s32.totalorder %s2052_s8, 3 }
  0x1e   : > { %s3808_s17 = scalar_select %p3053_p7, 1, 0 }
  0x1f   : > { %s42_s19 = sor.u32 %s41_s18, %s40_s13  ;;  %p174_p10 = scmp.eq.s32.totalorder %s41_s18, 0 }
  0x20   : > { %p43_p11 = scmp.eq.s32.totalorder %s42_s19, 0  ;;  %p3061_p12 = por %p187_p9, %p186_p8 }
  0x21   : > { %s3066_s24 = scalar_select %p174_p10, %s2886_s23, %s176_s16  }
  0x22   : > { %s3809_s20 = scalar_select %p3061_p12, 1, 0 }
  0x23   : > { %3811 = sst [smem:[#allocation26_spill]] %s3066_s24  ;;  %p192_p13 = scmp.ne.s32.totalorder %s2882_s22, %s2878_s21 }
  0x24   : > { %3810 = sst [smem:[#allocation25_spill]] %s3809_s20  ;;  %p193_p0 = scmp.eq.s32.totalorder %s2053_s9, 3 }
  0x25   : > { %s3069_s10 = scalar_select %p43_p11, %s2898_s26, %s45_s12  }
  0x26   : > { %p2054_p1 = scmp.ge.s32.totalorder %s2918_s7, 1  ;;  %p200_p2 = scmp.lt.s32.totalorder %s2918_s7, 5 }
  0x27   : > { %3812 = sst [smem:[#allocation27_spill]] %s3069_s10  ;;  %p3075_p4 = por %p193_p0, %p192_p13 }
  0x28   : > { %p3079_p5 = pnand %p2054_p1, %p200_p2  ;;  %s2920_s13 = smov [#allocation7]  }
  0x29   : > { %s3813_s6 = scalar_select %p3075_p4, 1, 0 }
  0x2a   : > { %s3815_s8 = scalar_select %p3079_p5, 1, 0 }
  0x2b   : > { %3814 = sst [smem:[#allocation28_spill]] %s3813_s6  ;;  %s212_s18 = sshll.u32 %s2920_s13, 4  ;;  %s213_s18 = int_to_ptr.vmem [resolvable:$true] %s212_s18 }
  0x2c   : > { %p2338_p8 = pneg %p3079_p5  ;;  %s2921_s9 = smov [#allocation9]  }
  0x2d   : > { %s225_s16 = sshll.u32 %s2921_s9, 4  ;;  %s3817_s1 = sld [smem:[#allocation29_spill]]  ;;  %s3091_s16 = int_to_ptr.vmem [resolvable:$true] %s225_s16 }
  0x2e   : > { %p3087_p9 = pnand %p2338_p8, %p3044_p6 }
  0x30   : > { %p3101_p11 = pneg %p3087_p9 }
  0x33   : > { %s2704_s10 = scalar_lea.hbm %s3817_s1, 4096 }
  0x34   : > { %p2705_p10 = scmp.ne.s32.totalorder %s3817_s1, %s2704_s10  ;;  %p2711_p1 = scmp.lt.u32.totalorder %s2704_s10, %s3817_s1 }
  0x36   : > { %p2707_p13 = pnand %p3101_p11, %p2705_p10 }
  0x38   : > { %p2708_p0 = pneg %p2707_p13 }
  0x3a   : > { %p2713_p2 = pnand %p2711_p1, %p2708_p0 }
  0x3c   : > { %2716 = shalt.err (!%p2713_p2)
}
  0x3d   : > { %s2717_s11 = scalar_lea.vmem %s213_s18, 4096  ;;  %p2725_p6 = scmp.lt.s32.totalorder %s213_s18, %s213_s18 }
  0x3e   : > { %p2718_p8 = scmp.ne.s32.totalorder %s213_s18, %s2717_s11  ;;  %p2726_p7 = scmp.lt.s32.totalorder %s2717_s11, %s2717_s11 }
  0x40   : > { %p2720_p4 = pnand %p2718_p8, %p3101_p11  ;;  %p2727_p5 = por %p2726_p7, %p2725_p6 }
  0x42   : > { %p2721_p12 = pneg %p2720_p4 }
  0x44   : > { %p2728_p3 = pnand %p2727_p5, %p2721_p12 }
  0x46   : > { %2731 = shalt.err (!%p2728_p3)
}
  0x47   : > { %s2922_s23 = smov 256   ;;  %s2923_s24 = smov 16  }
  0x48   : > { %2341 = dma.hbm_to_vmem [thread:$0]  (!%p3087_p9), %s3817_s1, 4096, %s213_s18, [#allocation8], %s2922_s23, %s2922_s23, %s2923_s24  }
  0x49   : > { %s2732_s21 = scalar_lea.hbm %s3779_s2, 2048 }
  0x4a   : > { %p2733_p4 = scmp.ne.s32.totalorder %s3779_s2, %s2732_s21  ;;  %p2739_p7 = scmp.lt.u32.totalorder %s2732_s21, %s3779_s2 }
  0x4c   : > { %p2735_p6 = pnand %p2733_p4, %p3101_p11 }
  0x4e   : > { %p2736_p3 = pneg %p2735_p6 }
  0x50   : > { %p2741_p12 = pnand %p2739_p7, %p2736_p3 }
  0x52   : > { %2744 = shalt.err (!%p2741_p12)
}
  0x53   : > { %s2745_s18 = scalar_lea.vmem %s3091_s16, 2048  ;;  %p2753_p0 = scmp.lt.s32.totalorder %s3091_s16, %s3091_s16 }
  0x54   : > { %p2746_p5 = scmp.ne.s32.totalorder %s3091_s16, %s2745_s18  ;;  %p2754_p1 = scmp.lt.s32.totalorder %s2745_s18, %s2745_s18 }
  0x56   : > { %p2748_p10 = pnand %p2746_p5, %p3101_p11  ;;  %p2755_p2 = por %p2754_p1, %p2753_p0 }
  0x58   : > { %p2749_p13 = pneg %p2748_p10 }
  0x5a   : > { %p2756_p8 = pnand %p2755_p2, %p2749_p13 }
  0x5c   : > { %2759 = shalt.err (!%p2756_p8)
}
  0x5d   : > { %s2924_s28 = smov 128   ;;  %s2925_s5 = smov 8  }
  0x5e   : > { %2344 = dma.hbm_to_vmem [thread:$0]  (!%p3087_p9), %s3779_s2, 2048, %s3091_s16, [#allocation8], %s2924_s28, %s2924_s28, %s2925_s5  }
  0x5f   : > { %s2926_s23 = smov [#allocation10]   ;;  %s2760_s19 = scalar_lea.hbm %s3781_s4, 2048 }
  0x60   : > { %s241_s24 = sshll.u32 %s2926_s23, 4  ;;  %p2761_p4 = scmp.ne.s32.totalorder %s3781_s4, %s2760_s19  ;;  %s242_s24 = int_to_ptr.vmem [resolvable:$true] %s241_s24 }
  0x61   : > { %p2767_p7 = scmp.lt.u32.totalorder %s2760_s19, %s3781_s4 }
  0x62   : > { %p2763_p6 = pnand %p2761_p4, %p3101_p11 }
  0x64   : > { %p2764_p3 = pneg %p2763_p6 }
  0x66   : > { %p2769_p12 = pnand %p2767_p7, %p2764_p3 }
  0x68   : > { %2772 = shalt.err (!%p2769_p12)
}
  0x69   : > { %s2773_s16 = scalar_lea.vmem %s242_s24, 2048  ;;  %p2781_p0 = scmp.lt.s32.totalorder %s242_s24, %s242_s24 }
  0x6a   : > { %p2774_p5 = scmp.ne.s32.totalorder %s242_s24, %s2773_s16  ;;  %p2782_p1 = scmp.lt.s32.totalorder %s2773_s16, %s2773_s16 }
  0x6c   : > { %p2776_p10 = pnand %p2774_p5, %p3101_p11  ;;  %p2783_p2 = por %p2782_p1, %p2781_p0 }
  0x6e   : > { %p2777_p13 = pneg %p2776_p10 }
  0x70   : > { %p2784_p8 = pnand %p2783_p2, %p2777_p13 }
  0x72   : > { %2787 = shalt.err (!%p2784_p8)
}
  0x73   : > { %2347 = dma.hbm_to_vmem [thread:$0]  (!%p3087_p9), %s3781_s4, 2048, %s242_s24, [#allocation11], %s2924_s28, %s2924_s28, %s2925_s5  }
  0x74   : > { %p2058_p4 = scmp.ge.s32.totalorder %s2918_s7, 4 }
  0x76   : > { %254 = sbr.rel (%p2058_p4) target bundleno = 142 (0x8e), region = 36 }
  0x7d   : > { %s258_s1 = sand.u32 1, %s2898_s26   ;;  %s2142_s13 = sshll.u32 %s2914_s30, 3 }
  0x7e   : > { %s2059_s23 = sshll.u32 %s258_s1, 8  ;;  %s2143_s6 = sshll.u32 %s2910_s29, 7 }
  0x7f   : > { %s270_s12 = sadd.s32 %s2143_s6, %s2142_s13  ;;  %s262_s10 = scalar_lea.vmem [#allocation4], %s2059_s23 }
  0x80   : > { %s285_s19 = sshll.u32 %s262_s10, 4  ;;  %s2064_s28 = sshll.u32 %s270_s12, 6  ;;  %s286_s19 = int_to_ptr.vmem [resolvable:$true] %s285_s19 }
  0x81   : > { %p3819_p9 = scmp.ne.s32.totalorder %s3805_s14, 0  ;;  %s2927_s24 = smov 1024  }
  0x82   : > { %s2928_s11 = smov 512   ;;  %s2929_s18 = smov 2  }
  0x83   : > { %s2321_s5 = scalar_select %p3819_p9, [#allocation0], [#allocation15] }
  0x84   : > { %2322 = sst [smem:[#allocation14]] (%p3819_p9), %s2927_s24  ;;  %s2930_s16 = smov 256  }
  0x85   : > { %s277_s9 = sld [smem:[%s2321_s5]]   ;;  %s272_s13 = scalar_lea.hbm %s3777_s0, %s2064_s28 }
  0x86   : > { %2323 = sst [smem:[#allocation14 + $0x1]] (%p3819_p9), %s2928_s11  ;;  %s2931_s23 = smov 16  }
  0x87   : > { %2324 = sst [smem:[#allocation14 + $0x2]] (%p3819_p9), %s2929_s18  ;;  %s259_s10 = scalar_lea.sflag [#allocation5], %s258_s1 }
  0x88   : > { %2325 = sst [smem:[#allocation14 + $0x3]] (%p3819_p9), %s2930_s16  ;;  %s2932_s5 = smov [#allocation13]  }
  0x89   : > { %2326 = sst [smem:[#allocation14 + $0x4]] (%p3819_p9), %s2930_s16 }
  0x8a   : > { %2327 = sst [smem:[#allocation14 + $0x5]] (%p3819_p9), %s2931_s23 }
  0x8b   : > { %s2065_s6 = sshll.u32 %s277_s9, 26 }
  0x8c   : > { %s2066_s12 = sadd.s32 134217728, %s2065_s6 }
  0x8d   : > { %2328 = dma.general (%p3819_p9), %s272_s13, 4096, %s286_s19, %s259_s10, %s2932_s5, [#allocation14], %s2066_s12, 0  }
  0x8e PF: > { %p3820_p11 = scmp.ne.s32.totalorder %s3815_s8, 0 }
  0x8f   : > { %s312_s24 = sand.u32 (!%p3820_p11), 1, %s2894_s25   ;;  %p3821_p6 = scmp.ne.s32.totalorder (!%p3820_p11), %s3808_s17, 0 }
  0x90   : > { %310 = sbr.rel (%p3820_p11) target bundleno = 2707 (0xa93), region = 44  ;;  %s2068_s11 = sshll.u32 (!%p3820_p11), %s312_s24, 8 }
  0x91   : > { %s313_s28 = scalar_lea.sflag (!%p3820_p11), [#allocation5], %s312_s24  ;;  %s3184_s18 = scalar_lea.vmem (!%p3820_p11), [#allocation4], %s2068_s11 }
  0x97   : > { %2861 = dma.done.wait (%p3821_p6), %s313_s28, 4096  }
  0x98   : > { %2863 = vsyncadd (%p3821_p6), %s313_s28, 4294963200  ;;  %p3822_p3 = scmp.ne.s32.totalorder %s3806_s15, 0 }
  0x9a   : > { %2865 = dma.done.wait (%p3822_p3), [#allocation8], 6144  }
  0x9b   : > { %2867 = vsyncadd (%p3822_p3), [#allocation8], 4294961152 }
  0x9c   : > { %2869 = dma.done.wait (%p3822_p3), [#allocation11], 2048  }
  0x9d   : > { %2871 = vsyncadd (%p3822_p3), [#allocation11], 4294965248  ;;  %s354_s14 = sand.u32 1, %s2882_s22   ;;  %p2073_p7 = scmp.ne.s32.totalorder %s2902_s27, 0 }
  0x9e   : > { %s2072_s8 = sshll.u32 %s354_s14, 4  ;;  %v2933_v0 = vmov (!%p2073_p7), 0.0  }
  0x9f   : > { %s3201_s1 = scalar_lea.vmem [#allocation12], %s2072_s8  ;;  %364 = sbr.rel (%p2073_p7) target bundleno = 166 (0xa6), region = 64  ;;  %365 = vst [vmem:[#allocation2] sm:$0xff] (!%p2073_p7), %v2933_v0  ;;  %366 = vst [vmem:[#allocation2 + $0x8] sm:$0xff] (!%p2073_p7), %v2933_v0 }
  0xa0   : > { %367 = vst [vmem:[#allocation3] sm:$0xff] (!%p2073_p7), %v2933_v0  ;;  %368 = vst [vmem:[#allocation3 + $0x8] sm:$0xff] (!%p2073_p7), %v2933_v0 }
  0xa6 PF: > { %v3204_v1 = vld [vmem:[#allocation7 + $0x4] ss:$16 sps:$4 sm:$0xff]   ;;  %v3206_v2 = vld [vmem:[#allocation7] ss:$16 sps:$4 sm:$0xff]   ;;  %v2934_v3 = vmov 0   ;;  %v370_v34 = vld [vmem:[#allocation2 + $0x8] sm:$0xff] }
  0xa7   : > { %610 = vmatprep.mubr.bf16.mxu0 %v2934_v3  ;;  %653 = vmatprep.mubr.bf16.mxu1 %v2934_v3  ;;  %v3211_v4 = vld [vmem:[#allocation7 + $0xc] ss:$16 sps:$4 sm:$0xff]   ;;  %v3214_v5 = vld [vmem:[#allocation7 + $0x24] ss:$16 sps:$4 sm:$0xff]   ;;  %v3216_v6 = vld [vmem:[#allocation7 + $0x8] ss:$16 sps:$4 sm:$0xff]  }
  0xa8   : > { %578 = vmatprep.subr.bf16.mxu0 %v3204_v1  ;;  %v3218_v7 = vld [vmem:[#allocation7 + $0x20] ss:$16 sps:$4 sm:$0xff]   ;;  %621 = vmatprep.subr.bf16.mxu1 %v3211_v4  ;;  %v3221_v8 = vld [vmem:[#allocation7 + $0x2c] ss:$16 sps:$4 sm:$0xff]   ;;  %v3225_v9 = vld [vmem:[#allocation7 + $0x44] ss:$16 sps:$4 sm:$0xff]  }
  0xa9   : > { %579 = vmatpush1.bf16.msra.mxu0 %v3206_v2  ;;  %622 = vmatpush1.bf16.msra.mxu1 %v3216_v6  ;;  %v3228_v10 = vld [vmem:[#allocation7 + $0x28] ss:$16 sps:$4 sm:$0xff]   ;;  %v3230_v11 = vld [vmem:[#allocation7 + $0x40] ss:$16 sps:$4 sm:$0xff]   ;;  %v3233_v12 = vld [vmem:[#allocation7 + $0x4c] ss:$16 sps:$4 sm:$0xff]  }
  0xaa   : > { %580 = vmatprep.subr.bf16.mxu0 %v3214_v5  ;;  %623 = vmatprep.subr.bf16.mxu1 %v3221_v8  ;;  %v3236_v13 = vld [vmem:[#allocation7 + $0x64] ss:$16 sps:$4 sm:$0xff]   ;;  %v3239_v14 = vld [vmem:[#allocation7 + $0x48] ss:$16 sps:$4 sm:$0xff]   ;;  %v3242_v15 = vld [vmem:[#allocation7 + $0x6c] ss:$16 sps:$4 sm:$0xff]  }
  0xab   : > { %v3245_v16 = vld [vmem:[#allocation7 + $0x60] ss:$16 sps:$4 sm:$0xff]   ;;  %v3248_v17 = vld [vmem:[#allocation7 + $0x84] ss:$16 sps:$4 sm:$0xff]   ;;  %v3251_v18 = vld [vmem:[#allocation7 + $0x68] ss:$16 sps:$4 sm:$0xff]  }
  0xac   : > { %v3254_v19 = vld [vmem:[#allocation7 + $0x8c] ss:$16 sps:$4 sm:$0xff]   ;;  %v3257_v20 = vld [vmem:[#allocation7 + $0x80] ss:$16 sps:$4 sm:$0xff]   ;;  %v3260_v21 = vld [vmem:[#allocation7 + $0xa4] ss:$16 sps:$4 sm:$0xff]  }
  0xad   : > { %581 = vmatpush1.bf16.msra.mxu0 %v3218_v7  ;;  %624 = vmatpush1.bf16.msra.mxu1 %v3228_v10  ;;  %v3263_v22 = vld [vmem:[#allocation7 + $0x88] ss:$16 sps:$4 sm:$0xff]   ;;  %v3266_v23 = vld [vmem:[#allocation7 + $0xac] ss:$16 sps:$4 sm:$0xff]   ;;  %v3269_v24 = vld [vmem:[#allocation7 + $0xa0] ss:$16 sps:$4 sm:$0xff]  }
  0xae   : > { %582 = vmatprep.subr.bf16.mxu0 %v3225_v9  ;;  %625 = vmatprep.subr.bf16.mxu1 %v3233_v12  ;;  %v3272_v25 = vld [vmem:[#allocation7 + $0xc4] ss:$16 sps:$4 sm:$0xff]   ;;  %v3275_v26 = vld [vmem:[#allocation7 + $0xa8] ss:$16 sps:$4 sm:$0xff]   ;;  %v3278_v27 = vld [vmem:[#allocation7 + $0xcc] ss:$16 sps:$4 sm:$0xff]  }
  0xaf   : > { %v3281_v28 = vld [vmem:[#allocation7 + $0xc0] ss:$16 sps:$4 sm:$0xff]   ;;  %v3284_v29 = vld [vmem:[#allocation7 + $0xe4] ss:$16 sps:$4 sm:$0xff]   ;;  %v3287_v30 = vld [vmem:[#allocation7 + $0xc8] ss:$16 sps:$4 sm:$0xff]  }
  0xb0   : > { %v3290_v31 = vld [vmem:[#allocation7 + $0xec] ss:$16 sps:$4 sm:$0xff]   ;;  %v3293_v32 = vld [vmem:[#allocation7 + $0xe0] ss:$16 sps:$4 sm:$0xff]   ;;  %v3297_v35 = vld [vmem:[#allocation7 + $0xe8] ss:$16 sps:$4 sm:$0xff]  }
  0xb1   : > { %583 = vmatpush1.bf16.msra.mxu0 %v3230_v11  ;;  %626 = vmatpush1.bf16.msra.mxu1 %v3239_v14  ;;  %v369_v33 = vld [vmem:[#allocation2] sm:$0xff]  ;;  %v375_v38 = vld [vmem:[%s3184_s18 + $0x10] sm:$0xff]  ;;  %v374_v42 = vld [vmem:[%s3184_s18 + $0x8] sm:$0xff]  ;;  %p2134_p12 = scmp.ne.s32.totalorder %s2902_s27, 1 }
  0xb2   : > { %584 = vmatprep.subr.bf16.mxu0 %v3236_v13  ;;  %627 = vmatprep.subr.bf16.mxu1 %v3242_v15  ;;  %v385_v36 = vpack.c.bf16 %v370_v34, %v369_v33  ;;  %v373_v37 = vld [vmem:[%s3184_s18] sm:$0xff]  ;;  %v381_v41 = vunpack.c.l.bf16 %v375_v38  ;;  %v382_v44 = vunpack.c.h.bf16 %v375_v38  ;;  %v376_v47 = vld [vmem:[%s3184_s18 + $0x18] sm:$0xff]  ;;  %v380_v51 = vunpack.c.h.bf16 %v374_v42  ;;  %s3823_s9 = sld [smem:[#allocation30_spill]] (!%p2134_p12) }
  0xb3   : > { %v377_v39 = vunpack.c.l.bf16 %v373_v37  ;;  %v378_v40 = vunpack.c.h.bf16 %v373_v37  ;;  %v384_v59 = vunpack.c.h.bf16 %v376_v47  ;;  %v379_v63 = vunpack.c.l.bf16 %v374_v42 }
  0xb4   : > { %v383_v33 = vunpack.c.l.bf16 %v376_v47 }
  0xb5   : > { %585 = vmatpush1.bf16.msra.mxu0 %v3245_v16  ;;  %628 = vmatpush1.bf16.msra.mxu1 %v3251_v18 }
  0xb6   : > { %586 = vmatprep.subr.bf16.mxu0 %v3248_v17  ;;  %629 = vmatprep.subr.bf16.mxu1 %v3254_v19 }
  0xb9   : > { %587 = vmatpush1.bf16.msra.mxu0 %v3257_v20  ;;  %630 = vmatpush1.bf16.msra.mxu1 %v3263_v22 }
  0xba   : > { %588 = vmatprep.subr.bf16.mxu0 %v3260_v21  ;;  %631 = vmatprep.subr.bf16.mxu1 %v3266_v23 }
  0xbd   : > { %589 = vmatpush1.bf16.msra.mxu0 %v3269_v24  ;;  %632 = vmatpush1.bf16.msra.mxu1 %v3275_v26 }
  0xbe   : > { %590 = vmatprep.subr.bf16.mxu0 %v3272_v25  ;;  %633 = vmatprep.subr.bf16.mxu1 %v3278_v27 }
  0xc1   : > { %591 = vmatpush1.bf16.msra.mxu0 %v3281_v28  ;;  %634 = vmatpush1.bf16.msra.mxu1 %v3287_v30 }
  0xc2   : > { %592 = vmatprep.subr.bf16.mxu0 %v3284_v29  ;;  %635 = vmatprep.subr.bf16.mxu1 %v3290_v31 }
  0xc5   : > { %593 = vmatpush1.bf16.msra.mxu0 %v3293_v32  ;;  %636 = vmatpush1.bf16.msra.mxu1 %v3297_v35 }
  0xc6   : > { %722 = vmatprep.subr.bf16.mxu0 %v3204_v1  ;;  %765 = vmatprep.subr.bf16.mxu1 %v3211_v4 }
  0xc8   : > { %611 = vmatmul.mubr.bf16.vlgmr.msra.gmra.mrb[0].mxu0 %v385_v36  ;;  %654 = vmatmul.mubr.bf16.vlgmr.msra.gmra.mrb[0].mxu1 %v385_v36 }
  0xc9   : > { %723 = vmatpush1.bf16.msra.mxu0 %v3206_v2  ;;  %754 = vmatprep.mubr.bf16.mxu0 %v2934_v3 }
  0xca   : > { %724 = vmatprep.subr.bf16.mxu0 %v3214_v5  ;;  %766 = vmatpush1.bf16.msra.mxu1 %v3216_v6 }
  0xcb   : > { %797 = vmatprep.mubr.bf16.mxu1 %v2934_v3  ;;  %767 = vmatprep.subr.bf16.mxu1 %v3221_v8 }
  0xcd   : > { %725 = vmatpush1.bf16.msra.mxu0 %v3218_v7 }
  0xce   : > { %726 = vmatprep.subr.bf16.mxu0 %v3225_v9  ;;  %768 = vmatpush1.bf16.msra.mxu1 %v3228_v10 }
  0xcf   : > { %769 = vmatprep.subr.bf16.mxu1 %v3233_v12 }
  0xd1   : > { %727 = vmatpush1.bf16.msra.mxu0 %v3230_v11 }
  0xd2   : > { %728 = vmatprep.subr.bf16.mxu0 %v3236_v13  ;;  %770 = vmatpush1.bf16.msra.mxu1 %v3239_v14 }
  0xd3   : > { %771 = vmatprep.subr.bf16.mxu1 %v3242_v15 }
  0xd5   : > { %729 = vmatpush1.bf16.msra.mxu0 %v3245_v16 }
  0xd6   : > { %730 = vmatprep.subr.bf16.mxu0 %v3248_v17  ;;  %772 = vmatpush1.bf16.msra.mxu1 %v3251_v18 }
  0xd7   : > { %773 = vmatprep.subr.bf16.mxu1 %v3254_v19 }
  0xd9   : > { %731 = vmatpush1.bf16.msra.mxu0 %v3257_v20 }
  0xda   : > { %732 = vmatprep.subr.bf16.mxu0 %v3260_v21  ;;  %774 = vmatpush1.bf16.msra.mxu1 %v3263_v22 }
  0xdb   : > { %775 = vmatprep.subr.bf16.mxu1 %v3266_v23 }
  0xdd   : > { %733 = vmatpush1.bf16.msra.mxu0 %v3269_v24 }
  0xde   : > { %734 = vmatprep.subr.bf16.mxu0 %v3272_v25  ;;  %776 = vmatpush1.bf16.msra.mxu1 %v3275_v26 }
  0xdf   : > { %777 = vmatprep.subr.bf16.mxu1 %v3278_v27 }
  0xe1   : > { %735 = vmatpush1.bf16.msra.mxu0 %v3281_v28 }
  0xe2   : > { %736 = vmatprep.subr.bf16.mxu0 %v3284_v29  ;;  %778 = vmatpush1.bf16.msra.mxu1 %v3287_v30 }
  0xe3   : > { %779 = vmatprep.subr.bf16.mxu1 %v3290_v31 }
  0xe5   : > { %737 = vmatpush1.bf16.msra.mxu0 %v3293_v32 }
  0xe6   : > { %866 = vmatprep.subr.bf16.mxu0 %v3204_v1  ;;  %780 = vmatpush1.bf16.msra.mxu1 %v3297_v35 }
  0xe7   : > { %909 = vmatprep.subr.bf16.mxu1 %v3211_v4 }
 0x19b   : > { %v612_v43 = vpop.f32.mrb[0].mxu0  ;;  %v655_v50 = vpop.f32.mrb[0].mxu1 }
 0x19c   : > { %v664_v45 = vadd.f32 %v612_v43, %v377_v39  ;;  %v614_v46 = vpop.f32.mrb[1].mxu0  ;;  %v657_v55 = vpop.f32.mrb[1].mxu1  ;;  %v666_v36 = vadd.f32 %v655_v50, %v379_v63 }
 0x19d   : > { %v665_v48 = vadd.f32 %v614_v46, %v378_v40  ;;  %v616_v49 = vpop.f32.mrb[2].mxu0  ;;  %v659_v58 = vpop.f32.mrb[2].mxu1  ;;  %v667_v0 = vadd.f32 %v657_v55, %v380_v51 }
 0x19e   : > { %v672_v52 = vmul.f32 0.5, %v664_v45  ;;  %v668_v53 = vadd.f32 %v616_v49, %v381_v41  ;;  %v618_v54 = vpop.f32.mrb[3].mxu0  ;;  %v661_v61 = vpop.f32.mrb[3].mxu1  ;;  %v670_v37 = vadd.f32 %v659_v58, %v383_v33  ;;  %v674_v38 = vmul.f32 0.5, %v666_v36  ;;  %v371_v49 = vld [vmem:[#allocation3] sm:$0xff] }
 0x19f   : > { %v673_v56 = vmul.f32 0.5, %v665_v48  ;;  %v669_v57 = vadd.f32 %v618_v54, %v382_v44  ;;  %v671_v34 = vadd.f32 %v661_v61, %v384_v59 }
 0x1a0   : > { %2512 = vtanh.f32 %v672_v52  ;;  %v675_v60 = vmul.f32 0.5, %v668_v53  ;;  %v677_v40 = vmul.f32 0.5, %v670_v37  ;;  %v372_v53 = vld [vmem:[#allocation3 + $0x8] sm:$0xff] }
 0x1a1   : > { %2514 = vtanh.f32 %v673_v56  ;;  %v676_v62 = vmul.f32 0.5, %v669_v57 }
 0x1a2   : > { %2516 = vtanh.f32 %v675_v60 }
 0x1a3   : > { %2518 = vtanh.f32 %v676_v62 }
 0x1a4   : > { %2520 = vtanh.f32 %v667_v0 }
 0x1a5   : > { %2522 = vtanh.f32 %v671_v34 }
 0x1a6   : > { %2524 = vtanh.f32 %v674_v38 }
 0x1a7   : > { %2526 = vtanh.f32 %v677_v40 }
 0x1aa   : > { %v2513_v39 = vpop.eup %2512 }
 0x1ab   : > { %v2515_v41 = vpop.eup %2514  ;;  %v684_v43 = vadd.f32 1.0, %v2513_v39 }
 0x1ac   : > { %v2517_v44 = vpop.eup %2516  ;;  %v685_v45 = vadd.f32 1.0, %v2515_v41 }
 0x1ad   : > { %v2519_v46 = vpop.eup %2518  ;;  %v690_v48 = vmul.f32 0.5, %v684_v43  ;;  %v687_v42 = vadd.f32 1.0, %v2517_v44  ;;  %v2106_v43 = vld [vmem:[%s3184_s18 + $0x20] sm:$0xff]  ;;  %v2108_v44 = vld [vmem:[%s3184_s18 + $0x30] sm:$0xff] }
 0x1ae   : > { %v691_v51 = vmul.f32 0.5, %v685_v45  ;;  %v688_v47 = vadd.f32 1.0, %v2519_v46  ;;  %v2521_v52 = vpop.eup %2520  ;;  %v713_v45 = vunpack.c.l.bf16 %v2106_v43  ;;  %v2107_v46 = vld [vmem:[%s3184_s18 + $0x28] sm:$0xff] }
 0x1af   : > { %v693_v50 = vmul.f32 0.5, %v687_v42  ;;  %v700_v56 = vmul.f32 %v2521_v52, %v690_v48  ;;  %v2523_v57 = vpop.eup %2522  ;;  %v714_v48 = vunpack.c.h.bf16 %v2106_v43 }
 0x1b0   : > { %v698_v54 = vmul.f32 %v691_v51, %v371_v49  ;;  %v694_v55 = vmul.f32 0.5, %v688_v47  ;;  %v2525_v62 = vpop.eup %2524  ;;  %v717_v49 = vunpack.c.l.bf16 %v2108_v44  ;;  %v718_v47 = vunpack.c.h.bf16 %v2108_v44 }
 0x1b1   : > { %v701_v60 = vmul.f32 %v2523_v57, %v693_v50  ;;  %v2527_v63 = vpop.eup %2526  ;;  %v686_v0 = vadd.f32 1.0, %v2525_v62 }
 0x1b2   : > { %v699_v58 = vmul.f32 %v694_v55, %v372_v53  ;;  %v3342_v59 = vadd.f32 %v700_v56, %v698_v54  ;;  %v689_v33 = vadd.f32 1.0, %v2527_v63  ;;  %v716_v53 = vunpack.c.h.bf16 %v2107_v46  ;;  %v2109_v55 = vld [vmem:[%s3184_s18 + $0x38] sm:$0xff] }
 0x1b3   : > { %v692_v36 = vmul.f32 0.5, %v686_v0  ;;  %v719_v43 = vunpack.c.l.bf16 %v2109_v55 }
 0x1b4   : > { %2528 = vtanh.f32 %v3342_v59  ;;  %v3345_v61 = vadd.f32 %v701_v60, %v699_v58  ;;  %v695_v37 = vmul.f32 0.5, %v689_v33 }
 0x1b6   : > { %2530 = vtanh.f32 %v3345_v61 }
 0x1be   : > { %v2529_v34 = vpop.eup %2528 }
 0x1bf   : > { %v706_v39 = vmul.f32 %v2529_v34, %v692_v36  ;;  %v720_v36 = vunpack.c.h.bf16 %v2109_v55 }
 0x1c0   : > { %v2531_v38 = vpop.eup %2530 }
 0x1c1   : > { %v707_v40 = vmul.f32 %v2531_v38, %v695_v37 }
 0x1c3   : > { %v721_v41 = vpack.c.bf16 %v707_v40, %v706_v39  ;;  %v715_v40 = vunpack.c.l.bf16 %v2107_v46 }
 0x1c5   : > { %755 = vmatmul.mubr.bf16.vlgmr.msra.gmra.mrb[4].mxu0 %v721_v41  ;;  %798 = vmatmul.mubr.bf16.vlgmr.msra.gmra.mrb[4].mxu1 %v721_v41 }
 0x1c6   : > { %867 = vmatpush1.bf16.msra.mxu0 %v3206_v2  ;;  %910 = vmatpush1.bf16.msra.mxu1 %v3216_v6 }
 0x1c7   : > { %868 = vmatprep.subr.bf16.mxu0 %v3214_v5  ;;  %911 = vmatprep.subr.bf16.mxu1 %v3221_v8 }
 0x1c8   : > { %898 = vmatprep.mubr.bf16.mxu0 %v2934_v3  ;;  %941 = vmatprep.mubr.bf16.mxu1 %v2934_v3 }
 0x1ca   : > { %869 = vmatpush1.bf16.msra.mxu0 %v3218_v7  ;;  %912 = vmatpush1.bf16.msra.mxu1 %v3228_v10 }
 0x1cb   : > { %870 = vmatprep.subr.bf16.mxu0 %v3225_v9  ;;  %913 = vmatprep.subr.bf16.mxu1 %v3233_v12 }
 0x1ce   : > { %871 = vmatpush1.bf16.msra.mxu0 %v3230_v11  ;;  %914 = vmatpush1.bf16.msra.mxu1 %v3239_v14 }
 0x1cf   : > { %872 = vmatprep.subr.bf16.mxu0 %v3236_v13  ;;  %915 = vmatprep.subr.bf16.mxu1 %v3242_v15 }
 0x1d2   : > { %873 = vmatpush1.bf16.msra.mxu0 %v3245_v16  ;;  %916 = vmatpush1.bf16.msra.mxu1 %v3251_v18 }
 0x1d3   : > { %874 = vmatprep.subr.bf16.mxu0 %v3248_v17  ;;  %917 = vmatprep.subr.bf16.mxu1 %v3254_v19 }
 0x1d6   : > { %875 = vmatpush1.bf16.msra.mxu0 %v3257_v20  ;;  %918 = vmatpush1.bf16.msra.mxu1 %v3263_v22 }
 0x1d7   : > { %876 = vmatprep.subr.bf16.mxu0 %v3260_v21  ;;  %919 = vmatprep.subr.bf16.mxu1 %v3266_v23 }
 0x1da   : > { %877 = vmatpush1.bf16.msra.mxu0 %v3269_v24  ;;  %920 = vmatpush1.bf16.msra.mxu1 %v3275_v26 }
 0x1db   : > { %878 = vmatprep.subr.bf16.mxu0 %v3272_v25  ;;  %921 = vmatprep.subr.bf16.mxu1 %v3278_v27 }
 0x1de   : > { %879 = vmatpush1.bf16.msra.mxu0 %v3281_v28  ;;  %922 = vmatpush1.bf16.msra.mxu1 %v3287_v30 }
 0x1df   : > { %880 = vmatprep.subr.bf16.mxu0 %v3284_v29  ;;  %923 = vmatprep.subr.bf16.mxu1 %v3290_v31 }
 0x1e2   : > { %881 = vmatpush1.bf16.msra.mxu0 %v3293_v32  ;;  %924 = vmatpush1.bf16.msra.mxu1 %v3297_v35 }
 0x1e3   : > { %1010 = vmatprep.subr.bf16.mxu0 %v3204_v1  ;;  %1053 = vmatprep.subr.bf16.mxu1 %v3211_v4 }
 0x298   : > { %v756_v42 = vpop.f32.mrb[4].mxu0  ;;  %v799_v51 = vpop.f32.mrb[4].mxu1 }
 0x299   : > { %v808_v52 = vadd.f32 %v756_v42, %v713_v45  ;;  %v758_v50 = vpop.f32.mrb[5].mxu0  ;;  %v801_v54 = vpop.f32.mrb[5].mxu1  ;;  %v810_v44 = vadd.f32 %v799_v51, %v715_v40 }
 0x29a   : > { %v809_v56 = vadd.f32 %v758_v50, %v714_v48  ;;  %v760_v57 = vpop.f32.mrb[6].mxu0  ;;  %v803_v58 = vpop.f32.mrb[6].mxu1  ;;  %v811_v37 = vadd.f32 %v801_v54, %v716_v53 }
 0x29b   : > { %v816_v60 = vmul.f32 0.5, %v808_v52  ;;  %v812_v62 = vadd.f32 %v760_v57, %v717_v49  ;;  %v762_v63 = vpop.f32.mrb[7].mxu0  ;;  %v805_v0 = vpop.f32.mrb[7].mxu1  ;;  %v814_v45 = vadd.f32 %v803_v58, %v719_v43  ;;  %v818_v42 = vmul.f32 0.5, %v810_v44 }
 0x29c   : > { %v817_v33 = vmul.f32 0.5, %v809_v56  ;;  %v813_v34 = vadd.f32 %v762_v63, %v718_v47  ;;  %v815_v41 = vadd.f32 %v805_v0, %v720_v36 }
 0x29d   : > { %2532 = vtanh.f32 %v816_v60  ;;  %v819_v38 = vmul.f32 0.5, %v812_v62  ;;  %v821_v47 = vmul.f32 0.5, %v814_v45 }
 0x29e   : > { %v820_v39 = vmul.f32 0.5, %v813_v34  ;;  %2534 = vtanh.f32 %v817_v33 }
 0x29f   : > { %2536 = vtanh.f32 %v819_v38 }
 0x2a0   : > { %2538 = vtanh.f32 %v811_v37 }
 0x2a1   : > { %2540 = vtanh.f32 %v820_v39 }
 0x2a2   : > { %2542 = vtanh.f32 %v815_v41 }
 0x2a3   : > { %2544 = vtanh.f32 %v818_v42 }
 0x2a4   : > { %2546 = vtanh.f32 %v821_v47 }
 0x2a7   : > { %v2533_v48 = vpop.eup %2532 }
 0x2a8   : > { %v828_v49 = vadd.f32 1.0, %v2533_v48  ;;  %v2535_v52 = vpop.eup %2534 }
 0x2a9   : > { %v2537_v50 = vpop.eup %2536  ;;  %v829_v53 = vadd.f32 1.0, %v2535_v52  ;;  %v2112_v52 = vld [vmem:[%s3184_s18 + $0x50] sm:$0xff] }
 0x2aa   : > { %v834_v56 = vmul.f32 0.5, %v828_v49  ;;  %v2539_v54 = vpop.eup %2538  ;;  %v831_v57 = vadd.f32 1.0, %v2537_v50  ;;  %v2111_v50 = vld [vmem:[%s3184_s18 + $0x48] sm:$0xff] }
 0x2ab   : > { %v2541_v60 = vpop.eup %2540  ;;  %v835_v46 = vmul.f32 0.5, %v829_v53  ;;  %v861_v53 = vunpack.c.l.bf16 %v2112_v52 }
 0x2ac   : > { %v844_v62 = vmul.f32 %v2539_v54, %v834_v56  ;;  %v837_v63 = vmul.f32 0.5, %v831_v57  ;;  %v832_v55 = vadd.f32 1.0, %v2541_v60  ;;  %v2543_v51 = vpop.eup %2542  ;;  %v862_v60 = vunpack.c.h.bf16 %v2112_v52 }
 0x2ad   : > { %v842_v58 = vmul.f32 %v835_v46, %v3342_v59  ;;  %v2545_v38 = vpop.eup %2544 }
 0x2ae   : > { %v838_v0 = vmul.f32 0.5, %v832_v55  ;;  %v845_v33 = vmul.f32 %v2543_v51, %v837_v63  ;;  %v2547_v39 = vpop.eup %2546  ;;  %v830_v40 = vadd.f32 1.0, %v2545_v38  ;;  %v860_v63 = vunpack.c.h.bf16 %v2111_v50  ;;  %v2113_v51 = vld [vmem:[%s3184_s18 + $0x58] sm:$0xff] }
 0x2af   : > { %v3387_v34 = vadd.f32 %v844_v62, %v842_v58  ;;  %v833_v41 = vadd.f32 1.0, %v2547_v39 }
 0x2b0   : > { %v843_v36 = vmul.f32 %v838_v0, %v3345_v61  ;;  %v836_v44 = vmul.f32 0.5, %v830_v40  ;;  %v2110_v61 = vld [vmem:[%s3184_s18 + $0x40] sm:$0xff] }
 0x2b1   : > { %2548 = vtanh.f32 %v3387_v34  ;;  %v839_v45 = vmul.f32 0.5, %v833_v41  ;;  %v857_v47 = vunpack.c.l.bf16 %v2110_v61  ;;  %v858_v56 = vunpack.c.h.bf16 %v2110_v61 }
 0x2b2   : > { %v3391_v37 = vadd.f32 %v845_v33, %v843_v36  ;;  %v863_v61 = vunpack.c.l.bf16 %v2113_v51 }
 0x2b4   : > { %2550 = vtanh.f32 %v3391_v37 }
 0x2bb   : > { %v2549_v43 = vpop.eup %2548 }
 0x2bc   : > { %v850_v48 = vmul.f32 %v2549_v43, %v836_v44  ;;  %v864_v44 = vunpack.c.h.bf16 %v2113_v51 }
 0x2be   : > { %v2551_v59 = vpop.eup %2550 }
 0x2bf   : > { %v851_v49 = vmul.f32 %v2551_v59, %v839_v45 }
 0x2c1   : > { %v865_v42 = vpack.c.bf16 %v851_v49, %v850_v48  ;;  %v859_v49 = vunpack.c.l.bf16 %v2111_v50 }
 0x2c3   : > { %899 = vmatmul.mubr.bf16.vlgmr.msra.gmra.mrb[8].mxu0 %v865_v42  ;;  %942 = vmatmul.mubr.bf16.vlgmr.msra.gmra.mrb[8].mxu1 %v865_v42 }
 0x2c4   : > { %1011 = vmatpush1.bf16.msra.mxu0 %v3206_v2  ;;  %1054 = vmatpush1.bf16.msra.mxu1 %v3216_v6 }
 0x2c5   : > { %1012 = vmatprep.subr.bf16.mxu0 %v3214_v5  ;;  %1055 = vmatprep.subr.bf16.mxu1 %v3221_v8 }
 0x2c6   : > { %1042 = vmatprep.mubr.bf16.mxu0 %v2934_v3  ;;  %1085 = vmatprep.mubr.bf16.mxu1 %v2934_v3 }
 0x2c8   : > { %1013 = vmatpush1.bf16.msra.mxu0 %v3218_v7  ;;  %1056 = vmatpush1.bf16.msra.mxu1 %v3228_v10 }
 0x2c9   : > { %1014 = vmatprep.subr.bf16.mxu0 %v3225_v9  ;;  %1057 = vmatprep.subr.bf16.mxu1 %v3233_v12 }
 0x2cc   : > { %1015 = vmatpush1.bf16.msra.mxu0 %v3230_v11  ;;  %1058 = vmatpush1.bf16.msra.mxu1 %v3239_v14 }
 0x2cd   : > { %1016 = vmatprep.subr.bf16.mxu0 %v3236_v13  ;;  %1059 = vmatprep.subr.bf16.mxu1 %v3242_v15 }
 0x2d0   : > { %1017 = vmatpush1.bf16.msra.mxu0 %v3245_v16  ;;  %1060 = vmatpush1.bf16.msra.mxu1 %v3251_v18 }
 0x2d1   : > { %1018 = vmatprep.subr.bf16.mxu0 %v3248_v17  ;;  %1061 = vmatprep.subr.bf16.mxu1 %v3254_v19 }
 0x2d4   : > { %1019 = vmatpush1.bf16.msra.mxu0 %v3257_v20  ;;  %1062 = vmatpush1.bf16.msra.mxu1 %v3263_v22 }
 0x2d5   : > { %1020 = vmatprep.subr.bf16.mxu0 %v3260_v21  ;;  %1063 = vmatprep.subr.bf16.mxu1 %v3266_v23 }
 0x2d8   : > { %1021 = vmatpush1.bf16.msra.mxu0 %v3269_v24  ;;  %1064 = vmatpush1.bf16.msra.mxu1 %v3275_v26 }
 0x2d9   : > { %1022 = vmatprep.subr.bf16.mxu0 %v3272_v25  ;;  %1065 = vmatprep.subr.bf16.mxu1 %v3278_v27 }
 0x2dc   : > { %1023 = vmatpush1.bf16.msra.mxu0 %v3281_v28  ;;  %1066 = vmatpush1.bf16.msra.mxu1 %v3287_v30 }
 0x2dd   : > { %1024 = vmatprep.subr.bf16.mxu0 %v3284_v29  ;;  %1067 = vmatprep.subr.bf16.mxu1 %v3290_v31 }
 0x2e0   : > { %1025 = vmatpush1.bf16.msra.mxu0 %v3293_v32  ;;  %1068 = vmatpush1.bf16.msra.mxu1 %v3297_v35 }
 0x2e1   : > { %1154 = vmatprep.subr.bf16.mxu0 %v3204_v1  ;;  %1197 = vmatprep.subr.bf16.mxu1 %v3211_v4 }
 0x396   : > { %v900_v54 = vpop.f32.mrb[8].mxu0  ;;  %v943_v57 = vpop.f32.mrb[8].mxu1 }
 0x397   : > { %v952_v46 = vadd.f32 %v900_v54, %v857_v47  ;;  %v902_v62 = vpop.f32.mrb[9].mxu0  ;;  %v945_v55 = vpop.f32.mrb[9].mxu1  ;;  %v954_v52 = vadd.f32 %v943_v57, %v859_v49 }
 0x398   : > { %v953_v58 = vadd.f32 %v902_v62, %v858_v56  ;;  %v904_v0 = vpop.f32.mrb[10].mxu0  ;;  %v947_v33 = vpop.f32.mrb[10].mxu1  ;;  %v955_v45 = vadd.f32 %v945_v55, %v860_v63 }
 0x399   : > { %v960_v36 = vmul.f32 0.5, %v952_v46  ;;  %v956_v38 = vadd.f32 %v904_v0, %v861_v53  ;;  %v906_v39 = vpop.f32.mrb[11].mxu0  ;;  %v949_v40 = vpop.f32.mrb[11].mxu1  ;;  %v958_v47 = vadd.f32 %v947_v33, %v863_v61  ;;  %v962_v54 = vmul.f32 0.5, %v954_v52 }
 0x39a   : > { %v961_v41 = vmul.f32 0.5, %v953_v58  ;;  %v957_v43 = vadd.f32 %v906_v39, %v862_v60  ;;  %v959_v42 = vadd.f32 %v949_v40, %v864_v44 }
 0x39b   : > { %2552 = vtanh.f32 %v960_v36  ;;  %v963_v59 = vmul.f32 0.5, %v956_v38  ;;  %v965_v60 = vmul.f32 0.5, %v958_v47 }
 0x39c   : > { %v964_v48 = vmul.f32 0.5, %v957_v43  ;;  %2554 = vtanh.f32 %v961_v41 }
 0x39d   : > { %2556 = vtanh.f32 %v963_v59 }
 0x39e   : > { %2558 = vtanh.f32 %v955_v45 }
 0x39f   : > { %2560 = vtanh.f32 %v964_v48 }
 0x3a0   : > { %2562 = vtanh.f32 %v959_v42 }
 0x3a1   : > { %2564 = vtanh.f32 %v962_v54 }
 0x3a2   : > { %2566 = vtanh.f32 %v965_v60 }
 0x3a5   : > { %v2553_v56 = vpop.eup %2552 }
 0x3a6   : > { %v972_v53 = vadd.f32 1.0, %v2553_v56  ;;  %v2555_v46 = vpop.eup %2554 }
 0x3a7   : > { %v2557_v62 = vpop.eup %2556  ;;  %v973_v63 = vadd.f32 1.0, %v2555_v46 }
 0x3a8   : > { %v978_v58 = vmul.f32 0.5, %v972_v53  ;;  %v2559_v55 = vpop.eup %2558  ;;  %v975_v0 = vadd.f32 1.0, %v2557_v62 }
 0x3a9   : > { %v2561_v36 = vpop.eup %2560  ;;  %v979_v50 = vmul.f32 0.5, %v973_v63 }
 0x3aa   : > { %v988_v38 = vmul.f32 %v2559_v55, %v978_v58  ;;  %v981_v39 = vmul.f32 0.5, %v975_v0  ;;  %v976_v51 = vadd.f32 1.0, %v2561_v36  ;;  %v2563_v57 = vpop.eup %2562 }
 0x3ab   : > { %v986_v33 = vmul.f32 %v979_v50, %v3387_v34  ;;  %v2565_v59 = vpop.eup %2564 }
 0x3ac   : > { %v982_v40 = vmul.f32 0.5, %v976_v51  ;;  %v989_v41 = vmul.f32 %v2563_v57, %v981_v39  ;;  %v2567_v48 = vpop.eup %2566  ;;  %v974_v49 = vadd.f32 1.0, %v2565_v59 }
 0x3ad   : > { %v3433_v43 = vadd.f32 %v988_v38, %v986_v33  ;;  %v977_v42 = vadd.f32 1.0, %v2567_v48 }
 0x3ae   : > { %v987_v44 = vmul.f32 %v982_v40, %v3391_v37  ;;  %v980_v52 = vmul.f32 0.5, %v974_v49 }
 0x3af   : > { %2568 = vtanh.f32 %v3433_v43  ;;  %v983_v47 = vmul.f32 0.5, %v977_v42 }
 0x3b0   : > { %v3437_v45 = vadd.f32 %v989_v41, %v987_v44 }
 0x3b2   : > { %2570 = vtanh.f32 %v3437_v45 }
 0x3b9   : > { %v2569_v61 = vpop.eup %2568 }
 0x3ba   : > { %v994_v56 = vmul.f32 %v2569_v61, %v980_v52 }
 0x3bc   : > { %v2571_v34 = vpop.eup %2570 }
 0x3bd   : > { %v995_v53 = vmul.f32 %v2571_v34, %v983_v47 }
 0x3bf   : > { %v1009_v54 = vpack.c.bf16 %v995_v53, %v994_v56 }
 0x3c1   : > { %1043 = vmatmul.mubr.bf16.vlgmr.msra.gmra.mrb[12].mxu0 %v1009_v54  ;;  %1086 = vmatmul.mubr.bf16.vlgmr.msra.gmra.mrb[12].mxu1 %v1009_v54 }
 0x3c2   : > { %1155 = vmatpush1.bf16.msra.mxu0 %v3206_v2  ;;  %1198 = vmatpush1.bf16.msra.mxu1 %v3216_v6  ;;  %v2114_v2 = vld [vmem:[%s3184_s18 + $0x60] sm:$0xff] }
 0x3c3   : > { %1156 = vmatprep.subr.bf16.mxu0 %v3214_v5  ;;  %1199 = vmatprep.subr.bf16.mxu1 %v3221_v8  ;;  %v2116_v5 = vld [vmem:[%s3184_s18 + $0x70] sm:$0xff]  ;;  %v1001_v6 = vunpack.c.l.bf16 %v2114_v2  ;;  %v1002_v8 = vunpack.c.h.bf16 %v2114_v2 }
 0x3c4   : > { %1186 = vmatprep.mubr.bf16.mxu0 %v2934_v3  ;;  %1229 = vmatprep.mubr.bf16.mxu1 %v2934_v3 }
 0x3c6   : > { %1157 = vmatpush1.bf16.msra.mxu0 %v3218_v7  ;;  %1200 = vmatpush1.bf16.msra.mxu1 %v3228_v10  ;;  %v2115_v7 = vld [vmem:[%s3184_s18 + $0x68] sm:$0xff] }
 0x3c7   : > { %1158 = vmatprep.subr.bf16.mxu0 %v3225_v9  ;;  %1201 = vmatprep.subr.bf16.mxu1 %v3233_v12  ;;  %v1005_v9 = vunpack.c.l.bf16 %v2116_v5  ;;  %v1006_v12 = vunpack.c.h.bf16 %v2116_v5  ;;  %v1003_v50 = vunpack.c.l.bf16 %v2115_v7 }
 0x3ca   : > { %1159 = vmatpush1.bf16.msra.mxu0 %v3230_v11  ;;  %1202 = vmatpush1.bf16.msra.mxu1 %v3239_v14 }
 0x3cb   : > { %1160 = vmatprep.subr.bf16.mxu0 %v3236_v13  ;;  %1203 = vmatprep.subr.bf16.mxu1 %v3242_v15  ;;  %v1004_v15 = vunpack.c.h.bf16 %v2115_v7 }
 0x3ce   : > { %1161 = vmatpush1.bf16.msra.mxu0 %v3245_v16  ;;  %1204 = vmatpush1.bf16.msra.mxu1 %v3251_v18 }
 0x3cf   : > { %1162 = vmatprep.subr.bf16.mxu0 %v3248_v17  ;;  %1205 = vmatprep.subr.bf16.mxu1 %v3254_v19  ;;  %v2117_v17 = vld [vmem:[%s3184_s18 + $0x78] sm:$0xff] }
 0x3d0   : > { %v1008_v63 = vunpack.c.h.bf16 %v2117_v17  ;;  %v1007_v39 = vunpack.c.l.bf16 %v2117_v17 }
 0x3d2   : > { %1163 = vmatpush1.bf16.msra.mxu0 %v3257_v20  ;;  %1206 = vmatpush1.bf16.msra.mxu1 %v3263_v22 }
 0x3d3   : > { %1164 = vmatprep.subr.bf16.mxu0 %v3260_v21  ;;  %1207 = vmatprep.subr.bf16.mxu1 %v3266_v23 }
 0x3d6   : > { %1165 = vmatpush1.bf16.msra.mxu0 %v3269_v24  ;;  %1208 = vmatpush1.bf16.msra.mxu1 %v3275_v26 }
 0x3d7   : > { %1166 = vmatprep.subr.bf16.mxu0 %v3272_v25  ;;  %1209 = vmatprep.subr.bf16.mxu1 %v3278_v27 }
 0x3da   : > { %1167 = vmatpush1.bf16.msra.mxu0 %v3281_v28  ;;  %1210 = vmatpush1.bf16.msra.mxu1 %v3287_v30 }
 0x3db   : > { %1168 = vmatprep.subr.bf16.mxu0 %v3284_v29  ;;  %1211 = vmatprep.subr.bf16.mxu1 %v3290_v31 }
 0x3de   : > { %1169 = vmatpush1.bf16.msra.mxu0 %v3293_v32  ;;  %1212 = vmatpush1.bf16.msra.mxu1 %v3297_v35 }
 0x3df   : > { %1298 = vmatprep.subr.bf16.mxu0 %v3204_v1  ;;  %1341 = vmatprep.subr.bf16.mxu1 %v3211_v4 }
 0x494   : > { %v1044_v10 = vpop.f32.mrb[12].mxu0  ;;  %v1087_v11 = vpop.f32.mrb[12].mxu1 }
 0x495   : > { %v1096_v13 = vadd.f32 %v1044_v10, %v1001_v6  ;;  %v1046_v14 = vpop.f32.mrb[13].mxu0  ;;  %v1089_v16 = vpop.f32.mrb[13].mxu1  ;;  %v1098_v51 = vadd.f32 %v1087_v11, %v1003_v50  ;;  %v3521_v50 = vld [vmem:[#allocation7 + $0x6c] ss:$16 sps:$4 sm:$0xff]  }
 0x496   : > { %v1097_v18 = vadd.f32 %v1046_v14, %v1002_v8  ;;  %v1048_v19 = vpop.f32.mrb[14].mxu0  ;;  %v1091_v37 = vpop.f32.mrb[14].mxu1  ;;  %v1099_v55 = vadd.f32 %v1089_v16, %v1004_v15 }
 0x497   : > { %v1104_v1 = vmul.f32 0.5, %v1096_v13  ;;  %v1100_v46 = vadd.f32 %v1048_v19, %v1005_v9  ;;  %v1050_v4 = vpop.f32.mrb[15].mxu0  ;;  %v1093_v60 = vpop.f32.mrb[15].mxu1  ;;  %v1102_v57 = vadd.f32 %v1091_v37, %v1007_v39  ;;  %v1106_v41 = vmul.f32 0.5, %v1098_v51  ;;  %v3527_v39 = vld [vmem:[#allocation7 + $0x68] ss:$16 sps:$4 sm:$0xff]  }
 0x498   : > { %v1105_v62 = vmul.f32 0.5, %v1097_v18  ;;  %v1101_v58 = vadd.f32 %v1050_v4, %v1006_v12  ;;  %v1103_v38 = vadd.f32 %v1093_v60, %v1008_v63  ;;  %v3495_v4 = vld [vmem:[#allocation7 + $0x2c] ss:$16 sps:$4 sm:$0xff]   ;;  %v3500_v60 = vld [vmem:[#allocation7 + $0x20] ss:$16 sps:$4 sm:$0xff]  }
 0x499   : > { %2572 = vtanh.f32 %v1104_v1  ;;  %v1107_v0 = vmul.f32 0.5, %v1100_v46  ;;  %v1109_v59 = vmul.f32 0.5, %v1102_v57  ;;  %v3489_v1 = vld [vmem:[#allocation7 + $0x8] ss:$16 sps:$4 sm:$0xff]   ;;  %v3492_v46 = vld [vmem:[#allocation7 + $0x24] ss:$16 sps:$4 sm:$0xff]  }
 0x49a   : > { %v1108_v36 = vmul.f32 0.5, %v1101_v58  ;;  %2574 = vtanh.f32 %v1105_v62  ;;  %v3503_v62 = vld [vmem:[#allocation7 + $0x28] ss:$16 sps:$4 sm:$0xff]   ;;  %v3506_v58 = vld [vmem:[#allocation7 + $0x44] ss:$16 sps:$4 sm:$0xff]  }
 0x49b   : > { %2576 = vtanh.f32 %v1107_v0  ;;  %v3509_v63 = vld [vmem:[#allocation7 + $0x4c] ss:$16 sps:$4 sm:$0xff]   ;;  %v3515_v0 = vld [vmem:[#allocation7 + $0x48] ss:$16 sps:$4 sm:$0xff]   ;;  %v3530_v51 = vld [vmem:[#allocation7 + $0x84] ss:$16 sps:$4 sm:$0xff]  }
 0x49c   : > { %2578 = vtanh.f32 %v1099_v55  ;;  %v3512_v55 = vld [vmem:[#allocation7 + $0x40] ss:$16 sps:$4 sm:$0xff]   ;;  %v3533_v57 = vld [vmem:[#allocation7 + $0x8c] ss:$16 sps:$4 sm:$0xff]  }
 0x49d   : > { %2580 = vtanh.f32 %v1108_v36  ;;  %v3518_v36 = vld [vmem:[#allocation7 + $0x64] ss:$16 sps:$4 sm:$0xff]  }
 0x49e   : > { %2582 = vtanh.f32 %v1103_v38  ;;  %v3524_v38 = vld [vmem:[#allocation7 + $0x60] ss:$16 sps:$4 sm:$0xff]  }
 0x49f   : > { %2584 = vtanh.f32 %v1106_v41 }
 0x4a0   : > { %2586 = vtanh.f32 %v1109_v59 }
 0x4a3   : > { %v2573_v33 = vpop.eup %2572 }
 0x4a4   : > { %v1116_v40 = vadd.f32 1.0, %v2573_v33  ;;  %v2575_v44 = vpop.eup %2574 }
 0x4a5   : > { %v2577_v48 = vpop.eup %2576  ;;  %v1117_v42 = vadd.f32 1.0, %v2575_v44 }
 0x4a6   : > { %v1122_v49 = vmul.f32 0.5, %v1116_v40  ;;  %v2579_v61 = vpop.eup %2578  ;;  %v1119_v52 = vadd.f32 1.0, %v2577_v48  ;;  %v2121_v40 = vld [vmem:[%s3184_s18 + $0x98] sm:$0xff] }
 0x4a7   : > { %v2581_v47 = vpop.eup %2580  ;;  %v1123_v34 = vmul.f32 0.5, %v1117_v42 }
 0x4a8   : > { %v1132_v56 = vmul.f32 %v2579_v61, %v1122_v49  ;;  %v1125_v53 = vmul.f32 0.5, %v1119_v52  ;;  %v1120_v54 = vadd.f32 1.0, %v2581_v47  ;;  %v2583_v2 = vpop.eup %2582 }
 0x4a9   : > { %v1130_v5 = vmul.f32 %v1123_v34, %v3433_v43  ;;  %v2585_v11 = vpop.eup %2584  ;;  %v1152_v34 = vunpack.c.h.bf16 %v2121_v40 }
 0x4aa   : > { %v1126_v6 = vmul.f32 0.5, %v1120_v54  ;;  %v1133_v7 = vmul.f32 %v2583_v2, %v1125_v53  ;;  %v2587_v12 = vpop.eup %2586  ;;  %v1118_v13 = vadd.f32 1.0, %v2585_v11 }
 0x4ab   : > { %v3479_v8 = vadd.f32 %v1132_v56, %v1130_v5  ;;  %v1121_v14 = vadd.f32 1.0, %v2587_v12 }
 0x4ac   : > { %v1131_v9 = vmul.f32 %v1126_v6, %v3437_v45  ;;  %v1124_v16 = vmul.f32 0.5, %v1118_v13  ;;  %v3486_v45 = vld [vmem:[#allocation7] ss:$16 sps:$4 sm:$0xff]   ;;  %v1151_v6 = vunpack.c.l.bf16 %v2121_v40 }
 0x4ad   : > { %2588 = vtanh.f32 %v3479_v8  ;;  %v1127_v17 = vmul.f32 0.5, %v1121_v14 }
 0x4ae   : > { %v3483_v10 = vadd.f32 %v1133_v7, %v1131_v9 }
 0x4b0   : > { %2590 = vtanh.f32 %v3483_v10 }
 0x4b7   : > { %v2589_v15 = vpop.eup %2588 }
 0x4b8   : > { %v1138_v18 = vmul.f32 %v2589_v15, %v1124_v16 }
 0x4ba   : > { %v2591_v43 = vpop.eup %2590 }
 0x4bb   : > { %v1139_v19 = vmul.f32 %v2591_v43, %v1127_v17 }
 0x4bd   : > { %v1153_v37 = vpack.c.bf16 %v1139_v19, %v1138_v18 }
 0x4bf   : > { %1187 = vmatmul.mubr.bf16.vlgmr.msra.gmra.mrb[16].mxu0 %v1153_v37  ;;  %1230 = vmatmul.mubr.bf16.vlgmr.msra.gmra.mrb[16].mxu1 %v1153_v37 }
 0x4c0   : > { %1299 = vmatpush1.bf16.msra.mxu0 %v3486_v45  ;;  %1342 = vmatpush1.bf16.msra.mxu1 %v3489_v1 }
 0x4c1   : > { %1300 = vmatprep.subr.bf16.mxu0 %v3492_v46  ;;  %1343 = vmatprep.subr.bf16.mxu1 %v3495_v4 }
 0x4c2   : > { %1330 = vmatprep.mubr.bf16.mxu0 %v2934_v3  ;;  %1373 = vmatprep.mubr.bf16.mxu1 %v2934_v3 }
 0x4c4   : > { %1301 = vmatpush1.bf16.msra.mxu0 %v3500_v60  ;;  %1344 = vmatpush1.bf16.msra.mxu1 %v3503_v62 }
 0x4c5   : > { %1302 = vmatprep.subr.bf16.mxu0 %v3506_v58  ;;  %1345 = vmatprep.subr.bf16.mxu1 %v3509_v63 }
 0x4c8   : > { %1303 = vmatpush1.bf16.msra.mxu0 %v3512_v55  ;;  %1346 = vmatpush1.bf16.msra.mxu1 %v3515_v0 }
 0x4c9   : > { %1304 = vmatprep.subr.bf16.mxu0 %v3518_v36  ;;  %1347 = vmatprep.subr.bf16.mxu1 %v3521_v50 }
 0x4cc   : > { %1305 = vmatpush1.bf16.msra.mxu0 %v3524_v38  ;;  %1348 = vmatpush1.bf16.msra.mxu1 %v3527_v39 }
 0x4cd   : > { %1306 = vmatprep.subr.bf16.mxu0 %v3530_v51  ;;  %1349 = vmatprep.subr.bf16.mxu1 %v3533_v57 }
 0x4d0   : > { %1307 = vmatpush1.bf16.msra.mxu0 %v3257_v20  ;;  %1350 = vmatpush1.bf16.msra.mxu1 %v3263_v22  ;;  %v3550_v20 = vld [vmem:[#allocation7 + $0x4] ss:$16 sps:$4 sm:$0xff]  }
 0x4d1   : > { %1308 = vmatprep.subr.bf16.mxu0 %v3260_v21  ;;  %1351 = vmatprep.subr.bf16.mxu1 %v3266_v23  ;;  %v3553_v21 = vld [vmem:[#allocation7 + $0xc] ss:$16 sps:$4 sm:$0xff]   ;;  %v2118_v22 = vld [vmem:[%s3184_s18 + $0x80] sm:$0xff]  ;;  %v2120_v23 = vld [vmem:[%s3184_s18 + $0x90] sm:$0xff] }
 0x4d4   : > { %1309 = vmatpush1.bf16.msra.mxu0 %v3269_v24  ;;  %1352 = vmatpush1.bf16.msra.mxu1 %v3275_v26  ;;  %v1145_v24 = vunpack.c.l.bf16 %v2118_v22  ;;  %v1146_v26 = vunpack.c.h.bf16 %v2118_v22 }
 0x4d5   : > { %1310 = vmatprep.subr.bf16.mxu0 %v3272_v25  ;;  %1353 = vmatprep.subr.bf16.mxu1 %v3278_v27  ;;  %v2119_v25 = vld [vmem:[%s3184_s18 + $0x88] sm:$0xff]  ;;  %v1149_v27 = vunpack.c.l.bf16 %v2120_v23 }
 0x4d6   : > { %v1147_v2 = vunpack.c.l.bf16 %v2119_v25 }
 0x4d8   : > { %1311 = vmatpush1.bf16.msra.mxu0 %v3281_v28  ;;  %1354 = vmatpush1.bf16.msra.mxu1 %v3287_v30  ;;  %v1150_v30 = vunpack.c.h.bf16 %v2120_v23 }
 0x4d9   : > { %1312 = vmatprep.subr.bf16.mxu0 %v3284_v29  ;;  %1355 = vmatprep.subr.bf16.mxu1 %v3290_v31 }
 0x4dc   : > { %1313 = vmatpush1.bf16.msra.mxu0 %v3293_v32  ;;  %1356 = vmatpush1.bf16.msra.mxu1 %v3297_v35  ;;  %v1148_v35 = vunpack.c.h.bf16 %v2119_v25 }
 0x4dd   : > { %1442 = vmatprep.subr.bf16.mxu0 %v3550_v20  ;;  %1485 = vmatprep.subr.bf16.mxu1 %v3553_v21 }
 0x592   : > { %v1188_v28 = vpop.f32.mrb[16].mxu0  ;;  %v1231_v29 = vpop.f32.mrb[16].mxu1 }
 0x593   : > { %v1240_v31 = vadd.f32 %v1188_v28, %v1145_v24  ;;  %v1190_v32 = vpop.f32.mrb[17].mxu0  ;;  %v1233_v33 = vpop.f32.mrb[17].mxu1  ;;  %v1242_v7 = vadd.f32 %v1231_v29, %v1147_v2  ;;  %v3607_v2 = vld [vmem:[#allocation7 + $0xcc] ss:$16 sps:$4 sm:$0xff]  }
 0x594   : > { %v1241_v41 = vadd.f32 %v1190_v32, %v1146_v26  ;;  %v1192_v44 = vpop.f32.mrb[18].mxu0  ;;  %v1235_v59 = vpop.f32.mrb[18].mxu1  ;;  %v1243_v56 = vadd.f32 %v1233_v33, %v1148_v35 }
 0x595   : > { %v1248_v48 = vmul.f32 0.5, %v1240_v31  ;;  %v1244_v49 = vadd.f32 %v1192_v44, %v1149_v27  ;;  %v1194_v42 = vpop.f32.mrb[19].mxu0  ;;  %v1237_v61 = vpop.f32.mrb[19].mxu1  ;;  %v1246_v9 = vadd.f32 %v1235_v59, %v1151_v6  ;;  %v1250_v13 = vmul.f32 0.5, %v1242_v7  ;;  %v3613_v6 = vld [vmem:[#allocation7 + $0xc8] ss:$16 sps:$4 sm:$0xff]  }
 0x596   : > { %v1249_v52 = vmul.f32 0.5, %v1241_v41  ;;  %v1245_v47 = vadd.f32 %v1194_v42, %v1150_v30  ;;  %v1247_v5 = vadd.f32 %v1237_v61, %v1152_v34  ;;  %v3595_v34 = vld [vmem:[#allocation7 + $0xac] ss:$16 sps:$4 sm:$0xff]   ;;  %v3616_v7 = vld [vmem:[#allocation7 + $0xe4] ss:$16 sps:$4 sm:$0xff]  }
 0x597   : > { %2592 = vtanh.f32 %v1248_v48  ;;  %v1251_v53 = vmul.f32 0.5, %v1244_v49  ;;  %v1253_v15 = vmul.f32 0.5, %v1246_v9  ;;  %v3619_v9 = vld [vmem:[#allocation7 + $0xec] ss:$16 sps:$4 sm:$0xff]  }
 0x598   : > { %v1252_v54 = vmul.f32 0.5, %v1245_v47  ;;  %2594 = vtanh.f32 %v1249_v52  ;;  %v3589_v52 = vld [vmem:[#allocation7 + $0x88] ss:$16 sps:$4 sm:$0xff]   ;;  %v3592_v47 = vld [vmem:[#allocation7 + $0xa4] ss:$16 sps:$4 sm:$0xff]  }
 0x599   : > { %2596 = vtanh.f32 %v1251_v53  ;;  %v3601_v53 = vld [vmem:[#allocation7 + $0xa8] ss:$16 sps:$4 sm:$0xff]  }
 0x59a   : > { %2598 = vtanh.f32 %v1243_v56  ;;  %v3598_v56 = vld [vmem:[#allocation7 + $0xa0] ss:$16 sps:$4 sm:$0xff]  }
 0x59b   : > { %2600 = vtanh.f32 %v1252_v54  ;;  %v3604_v54 = vld [vmem:[#allocation7 + $0xc4] ss:$16 sps:$4 sm:$0xff]  }
 0x59c   : > { %2602 = vtanh.f32 %v1247_v5  ;;  %v3610_v5 = vld [vmem:[#allocation7 + $0xc0] ss:$16 sps:$4 sm:$0xff]  }
 0x59d   : > { %2604 = vtanh.f32 %v1250_v13  ;;  %v2122_v13 = vld [vmem:[%s3184_s18 + $0xa0] sm:$0xff] }
 0x59e   : > { %2606 = vtanh.f32 %v1253_v15  ;;  %v1289_v15 = vunpack.c.l.bf16 %v2122_v13 }
 0x5a1   : > { %v2593_v11 = vpop.eup %2592 }
 0x5a2   : > { %v1260_v12 = vadd.f32 1.0, %v2593_v11  ;;  %v2595_v14 = vpop.eup %2594  ;;  %v3622_v11 = vld [vmem:[#allocation7 + $0xe0] ss:$16 sps:$4 sm:$0xff]  }
 0x5a3   : > { %v2597_v16 = vpop.eup %2596  ;;  %v1261_v43 = vadd.f32 1.0, %v2595_v14  ;;  %v2124_v14 = vld [vmem:[%s3184_s18 + $0xb0] sm:$0xff] }
 0x5a4   : > { %v1266_v17 = vmul.f32 0.5, %v1260_v12  ;;  %v2599_v18 = vpop.eup %2598  ;;  %v1263_v19 = vadd.f32 1.0, %v2597_v16  ;;  %v3625_v12 = vld [vmem:[#allocation7 + $0xe8] ss:$16 sps:$4 sm:$0xff]  }
 0x5a5   : > { %v2601_v37 = vpop.eup %2600  ;;  %v1267_v22 = vmul.f32 0.5, %v1261_v43  ;;  %v2123_v16 = vld [vmem:[%s3184_s18 + $0xa8] sm:$0xff]  ;;  %v1293_v43 = vunpack.c.l.bf16 %v2124_v14 }
 0x5a6   : > { %v1276_v23 = vmul.f32 %v2599_v18, %v1266_v17  ;;  %v1269_v24 = vmul.f32 0.5, %v1263_v19  ;;  %v1264_v25 = vadd.f32 1.0, %v2601_v37  ;;  %v2603_v26 = vpop.eup %2602  ;;  %v1290_v17 = vunpack.c.h.bf16 %v2122_v13 }
 0x5a7   : > { %v1274_v27 = vmul.f32 %v1267_v22, %v3479_v8  ;;  %v2605_v35 = vpop.eup %2604  ;;  %v1294_v37 = vunpack.c.h.bf16 %v2124_v14 }
 0x5a8   : > { %v1270_v28 = vmul.f32 0.5, %v1264_v25  ;;  %v1277_v29 = vmul.f32 %v2603_v26, %v1269_v24  ;;  %v2607_v33 = vpop.eup %2606  ;;  %v1262_v40 = vadd.f32 1.0, %v2605_v35  ;;  %v1292_v24 = vunpack.c.h.bf16 %v2123_v16  ;;  %v2125_v26 = vld [vmem:[%s3184_s18 + $0xb8] sm:$0xff] }
 0x5a9   : > { %v3561_v30 = vadd.f32 %v1276_v23, %v1274_v27  ;;  %v1265_v41 = vadd.f32 1.0, %v2607_v33 }
 0x5aa   : > { %v1275_v31 = vmul.f32 %v1270_v28, %v3483_v10  ;;  %v1268_v59 = vmul.f32 0.5, %v1262_v40  ;;  %v3586_v10 = vld [vmem:[#allocation7 + $0x80] ss:$16 sps:$4 sm:$0xff]  }
 0x5ab   : > { %2608 = vtanh.f32 %v3561_v30  ;;  %v1271_v48 = vmul.f32 0.5, %v1265_v41  ;;  %v1296_v41 = vunpack.c.h.bf16 %v2125_v26 }
 0x5ac   : > { %v3565_v32 = vadd.f32 %v1277_v29, %v1275_v31 }
 0x5ae   : > { %2610 = vtanh.f32 %v3565_v32 }
 0x5b5   : > { %v2609_v44 = vpop.eup %2608 }
 0x5b6   : > { %v1282_v49 = vmul.f32 %v2609_v44, %v1268_v59 }
 0x5b8   : > { %v2611_v8 = vpop.eup %2610 }
 0x5b9   : > { %v1283_v42 = vmul.f32 %v2611_v8, %v1271_v48  ;;  %v1291_v8 = vunpack.c.l.bf16 %v2123_v16 }
 0x5bb   : > { %v1297_v61 = vpack.c.bf16 %v1283_v42, %v1282_v49  ;;  %v1295_v42 = vunpack.c.l.bf16 %v2125_v26 }
 0x5bd   : > { %1331 = vmatmul.mubr.bf16.vlgmr.msra.gmra.mrb[20].mxu0 %v1297_v61  ;;  %1374 = vmatmul.mubr.bf16.vlgmr.msra.gmra.mrb[20].mxu1 %v1297_v61 }
 0x5be   : > { %1443 = vmatpush1.bf16.msra.mxu0 %v3486_v45  ;;  %1486 = vmatpush1.bf16.msra.mxu1 %v3489_v1 }
 0x5bf   : > { %1444 = vmatprep.subr.bf16.mxu0 %v3492_v46  ;;  %1487 = vmatprep.subr.bf16.mxu1 %v3495_v4 }
 0x5c0   : > { %1474 = vmatprep.mubr.bf16.mxu0 %v2934_v3  ;;  %1517 = vmatprep.mubr.bf16.mxu1 %v2934_v3 }
 0x5c2   : > { %1445 = vmatpush1.bf16.msra.mxu0 %v3500_v60  ;;  %1488 = vmatpush1.bf16.msra.mxu1 %v3503_v62 }
 0x5c3   : > { %1446 = vmatprep.subr.bf16.mxu0 %v3506_v58  ;;  %1489 = vmatprep.subr.bf16.mxu1 %v3509_v63 }
 0x5c6   : > { %1447 = vmatpush1.bf16.msra.mxu0 %v3512_v55  ;;  %1490 = vmatpush1.bf16.msra.mxu1 %v3515_v0 }
 0x5c7   : > { %1448 = vmatprep.subr.bf16.mxu0 %v3518_v36  ;;  %1491 = vmatprep.subr.bf16.mxu1 %v3521_v50 }
 0x5ca   : > { %1449 = vmatpush1.bf16.msra.mxu0 %v3524_v38  ;;  %1492 = vmatpush1.bf16.msra.mxu1 %v3527_v39 }
 0x5cb   : > { %1450 = vmatprep.subr.bf16.mxu0 %v3530_v51  ;;  %1493 = vmatprep.subr.bf16.mxu1 %v3533_v57 }
 0x5ce   : > { %1451 = vmatpush1.bf16.msra.mxu0 %v3586_v10  ;;  %1494 = vmatpush1.bf16.msra.mxu1 %v3589_v52 }
 0x5cf   : > { %1452 = vmatprep.subr.bf16.mxu0 %v3592_v47  ;;  %1495 = vmatprep.subr.bf16.mxu1 %v3595_v34 }
 0x5d2   : > { %1453 = vmatpush1.bf16.msra.mxu0 %v3598_v56  ;;  %1496 = vmatpush1.bf16.msra.mxu1 %v3601_v53 }
 0x5d3   : > { %1454 = vmatprep.subr.bf16.mxu0 %v3604_v54  ;;  %1497 = vmatprep.subr.bf16.mxu1 %v3607_v2 }
 0x5d6   : > { %1455 = vmatpush1.bf16.msra.mxu0 %v3610_v5  ;;  %1498 = vmatpush1.bf16.msra.mxu1 %v3613_v6 }
 0x5d7   : > { %1456 = vmatprep.subr.bf16.mxu0 %v3616_v7  ;;  %1499 = vmatprep.subr.bf16.mxu1 %v3619_v9 }
 0x5da   : > { %1457 = vmatpush1.bf16.msra.mxu0 %v3622_v11  ;;  %1500 = vmatpush1.bf16.msra.mxu1 %v3625_v12 }
 0x5db   : > { %1586 = vmatprep.subr.bf16.mxu0 %v3550_v20  ;;  %1629 = vmatprep.subr.bf16.mxu1 %v3553_v21 }
 0x690   : > { %v1332_v18 = vpop.f32.mrb[20].mxu0  ;;  %v1375_v19 = vpop.f32.mrb[20].mxu1 }
 0x691   : > { %v1384_v22 = vadd.f32 %v1332_v18, %v1289_v15  ;;  %v1334_v23 = vpop.f32.mrb[21].mxu0  ;;  %v1377_v25 = vpop.f32.mrb[21].mxu1  ;;  %v1386_v61 = vadd.f32 %v1375_v19, %v1291_v8 }
 0x692   : > { %v1385_v27 = vadd.f32 %v1334_v23, %v1290_v17  ;;  %v1336_v28 = vpop.f32.mrb[22].mxu0  ;;  %v1379_v29 = vpop.f32.mrb[22].mxu1  ;;  %v1387_v44 = vadd.f32 %v1377_v25, %v1292_v24 }
 0x693   : > { %v1392_v20 = vmul.f32 0.5, %v1384_v22  ;;  %v1388_v31 = vadd.f32 %v1336_v28, %v1293_v43  ;;  %v1338_v21 = vpop.f32.mrb[23].mxu0  ;;  %v1381_v35 = vpop.f32.mrb[23].mxu1  ;;  %v1390_v13 = vadd.f32 %v1379_v29, %v1295_v42  ;;  %v1394_v17 = vmul.f32 0.5, %v1386_v61 }
 0x694   : > { %v1393_v33 = vmul.f32 0.5, %v1385_v27  ;;  %v1389_v40 = vadd.f32 %v1338_v21, %v1294_v37  ;;  %v1391_v49 = vadd.f32 %v1381_v35, %v1296_v41 }
 0x695   : > { %2612 = vtanh.f32 %v1392_v20  ;;  %v1395_v59 = vmul.f32 0.5, %v1388_v31  ;;  %v1397_v18 = vmul.f32 0.5, %v1390_v13 }
 0x696   : > { %v1396_v48 = vmul.f32 0.5, %v1389_v40  ;;  %2614 = vtanh.f32 %v1393_v33 }
 0x697   : > { %2616 = vtanh.f32 %v1395_v59 }
 0x698   : > { %2618 = vtanh.f32 %v1387_v44 }
 0x699   : > { %2620 = vtanh.f32 %v1396_v48 }
 0x69a   : > { %2622 = vtanh.f32 %v1391_v49 }
 0x69b   : > { %2624 = vtanh.f32 %v1394_v17 }
 0x69c   : > { %2626 = vtanh.f32 %v1397_v18 }
 0x69f   : > { %v2613_v14 = vpop.eup %2612 }
 0x6a0   : > { %v1404_v15 = vadd.f32 1.0, %v2613_v14  ;;  %v2615_v43 = vpop.eup %2614 }
 0x6a1   : > { %v2617_v37 = vpop.eup %2616  ;;  %v1405_v23 = vadd.f32 1.0, %v2615_v43 }
 0x6a2   : > { %v1410_v22 = vmul.f32 0.5, %v1404_v15  ;;  %v2619_v24 = vpop.eup %2618  ;;  %v1407_v25 = vadd.f32 1.0, %v2617_v37 }
 0x6a3   : > { %v2621_v27 = vpop.eup %2620  ;;  %v1411_v16 = vmul.f32 0.5, %v1405_v23 }
 0x6a4   : > { %v1420_v28 = vmul.f32 %v2619_v24, %v1410_v22  ;;  %v1413_v20 = vmul.f32 0.5, %v1407_v25  ;;  %v1408_v26 = vadd.f32 1.0, %v2621_v27  ;;  %v2623_v19 = vpop.eup %2622 }
 0x6a5   : > { %v1418_v29 = vmul.f32 %v1411_v16, %v3561_v30  ;;  %v2625_v41 = vpop.eup %2624 }
 0x6a6   : > { %v1414_v31 = vmul.f32 0.5, %v1408_v26  ;;  %v1421_v21 = vmul.f32 %v2623_v19, %v1413_v20  ;;  %v2627_v44 = vpop.eup %2626  ;;  %v1406_v59 = vadd.f32 1.0, %v2625_v41 }
 0x6a7   : > { %v3635_v35 = vadd.f32 %v1420_v28, %v1418_v29  ;;  %v1409_v48 = vadd.f32 1.0, %v2627_v44 }
 0x6a8   : > { %v1419_v33 = vmul.f32 %v1414_v31, %v3565_v32  ;;  %v1412_v49 = vmul.f32 0.5, %v1406_v59 }
 0x6a9   : > { %2628 = vtanh.f32 %v3635_v35  ;;  %v1415_v42 = vmul.f32 0.5, %v1409_v48 }
 0x6aa   : > { %v3639_v40 = vadd.f32 %v1421_v21, %v1419_v33 }
 0x6ac   : > { %2630 = vtanh.f32 %v3639_v40 }
 0x6b3   : > { %v2629_v8 = vpop.eup %2628 }
 0x6b4   : > { %v1426_v61 = vmul.f32 %v2629_v8, %v1412_v49 }
 0x6b6   : > { %v2631_v30 = vpop.eup %2630 }
 0x6b7   : > { %v1427_v13 = vmul.f32 %v2631_v30, %v1415_v42 }
 0x6b9   : > { %v1441_v14 = vpack.c.bf16 %v1427_v13, %v1426_v61 }
 0x6bb   : > { %1475 = vmatmul.mubr.bf16.vlgmr.msra.gmra.mrb[24].mxu0 %v1441_v14  ;;  %1518 = vmatmul.mubr.bf16.vlgmr.msra.gmra.mrb[24].mxu1 %v1441_v14 }
 0x6bc   : > { %1587 = vmatpush1.bf16.msra.mxu0 %v3486_v45  ;;  %1630 = vmatpush1.bf16.msra.mxu1 %v3489_v1  ;;  %v2128_v45 = vld [vmem:[%s3184_s18 + $0xd0] sm:$0xff] }
 0x6bd   : > { %1588 = vmatprep.subr.bf16.mxu0 %v3492_v46  ;;  %1631 = vmatprep.subr.bf16.mxu1 %v3495_v4  ;;  %v2127_v46 = vld [vmem:[%s3184_s18 + $0xc8] sm:$0xff] }
 0x6be   : > { %1618 = vmatprep.mubr.bf16.mxu0 %v2934_v3  ;;  %1661 = vmatprep.mubr.bf16.mxu1 %v2934_v3  ;;  %v2126_v3 = vld [vmem:[%s3184_s18 + $0xc0] sm:$0xff] }
 0x6bf   : > { %v1433_v1 = vunpack.c.l.bf16 %v2126_v3  ;;  %v1434_v4 = vunpack.c.h.bf16 %v2126_v3 }
 0x6c0   : > { %1589 = vmatpush1.bf16.msra.mxu0 %v3500_v60  ;;  %1632 = vmatpush1.bf16.msra.mxu1 %v3503_v62  ;;  %v1437_v60 = vunpack.c.l.bf16 %v2128_v45 }
 0x6c1   : > { %1590 = vmatprep.subr.bf16.mxu0 %v3506_v58  ;;  %1633 = vmatprep.subr.bf16.mxu1 %v3509_v63  ;;  %v1438_v63 = vunpack.c.h.bf16 %v2128_v45  ;;  %v2130_v45 = vld [vmem:[%s3184_s18 + $0xe0] sm:$0xff] }
 0x6c4   : > { %1591 = vmatpush1.bf16.msra.mxu0 %v3512_v55  ;;  %1634 = vmatpush1.bf16.msra.mxu1 %v3515_v0 }
 0x6c5   : > { %1592 = vmatprep.subr.bf16.mxu0 %v3518_v36  ;;  %1635 = vmatprep.subr.bf16.mxu1 %v3521_v50  ;;  %v1436_v36 = vunpack.c.h.bf16 %v2127_v46 }
 0x6c8   : > { %1593 = vmatpush1.bf16.msra.mxu0 %v3524_v38  ;;  %1636 = vmatpush1.bf16.msra.mxu1 %v3527_v39  ;;  %v2129_v38 = vld [vmem:[%s3184_s18 + $0xd8] sm:$0xff] }
 0x6c9   : > { %1594 = vmatprep.subr.bf16.mxu0 %v3530_v51  ;;  %1637 = vmatprep.subr.bf16.mxu1 %v3533_v57 }
 0x6cc   : > { %1595 = vmatpush1.bf16.msra.mxu0 %v3586_v10  ;;  %1638 = vmatpush1.bf16.msra.mxu1 %v3589_v52 }
 0x6cd   : > { %1596 = vmatprep.subr.bf16.mxu0 %v3592_v47  ;;  %1639 = vmatprep.subr.bf16.mxu1 %v3595_v34 }
 0x6d0   : > { %1597 = vmatpush1.bf16.msra.mxu0 %v3598_v56  ;;  %1640 = vmatpush1.bf16.msra.mxu1 %v3601_v53  ;;  %v1440_v53 = vunpack.c.h.bf16 %v2129_v38 }
 0x6d1   : > { %1598 = vmatprep.subr.bf16.mxu0 %v3604_v54  ;;  %1641 = vmatprep.subr.bf16.mxu1 %v3607_v2 }
 0x6d4   : > { %1599 = vmatpush1.bf16.msra.mxu0 %v3610_v5  ;;  %1642 = vmatpush1.bf16.msra.mxu1 %v3613_v6  ;;  %v1435_v6 = vunpack.c.l.bf16 %v2127_v46  ;;  %v1577_v46 = vunpack.c.l.bf16 %v2130_v45 }
 0x6d5   : > { %1600 = vmatprep.subr.bf16.mxu0 %v3616_v7  ;;  %1643 = vmatprep.subr.bf16.mxu1 %v3619_v9  ;;  %v1439_v9 = vunpack.c.l.bf16 %v2129_v38 }
 0x6d8   : > { %1601 = vmatpush1.bf16.msra.mxu0 %v3622_v11  ;;  %1644 = vmatpush1.bf16.msra.mxu1 %v3625_v12 }
 0x78e   : > { %v1476_v62 = vpop.f32.mrb[24].mxu0  ;;  %v1519_v58 = vpop.f32.mrb[24].mxu1 }
 0x78f   : > { %v1528_v55 = vadd.f32 %v1476_v62, %v1433_v1  ;;  %v1478_v0 = vpop.f32.mrb[25].mxu0  ;;  %v1521_v50 = vpop.f32.mrb[25].mxu1  ;;  %v1530_v11 = vadd.f32 %v1519_v58, %v1435_v6  ;;  %v2132_v1 = vld [vmem:[%s3184_s18 + $0xf0] sm:$0xff] }
 0x790   : > { %v1529_v39 = vadd.f32 %v1478_v0, %v1434_v4  ;;  %v1480_v51 = vpop.f32.mrb[26].mxu0  ;;  %v1523_v57 = vpop.f32.mrb[26].mxu1  ;;  %v1531_v54 = vadd.f32 %v1521_v50, %v1436_v36  ;;  %v2131_v4 = vld [vmem:[%s3184_s18 + $0xe8] sm:$0xff]  ;;  %v1581_v62 = vunpack.c.l.bf16 %v2132_v1 }
 0x791   : > { %v1536_v32 = vmul.f32 0.5, %v1528_v55  ;;  %v1532_v10 = vadd.f32 %v1480_v51, %v1437_v60  ;;  %v1482_v52 = vpop.f32.mrb[27].mxu0  ;;  %v1525_v47 = vpop.f32.mrb[27].mxu1  ;;  %v1534_v12 = vadd.f32 %v1523_v57, %v1439_v9  ;;  %v1538_v43 = vmul.f32 0.5, %v1530_v11 }
 0x792   : > { %v1537_v34 = vmul.f32 0.5, %v1529_v39  ;;  %v1533_v56 = vadd.f32 %v1482_v52, %v1438_v63  ;;  %v1535_v7 = vadd.f32 %v1525_v47, %v1440_v53  ;;  %v1578_v60 = vunpack.c.h.bf16 %v2130_v45  ;;  %v2133_v39 = vld [vmem:[%s3184_s18 + $0xf8] sm:$0xff] }
 0x793   : > { %2632 = vtanh.f32 %v1536_v32  ;;  %v1539_v2 = vmul.f32 0.5, %v1532_v10  ;;  %v1541_v37 = vmul.f32 0.5, %v1534_v12  ;;  %v1582_v55 = vunpack.c.h.bf16 %v2132_v1  ;;  %v1725_v1 = vld [vmem:[#allocation9 + $0x8] sm:$0xff] (!%p2134_p12) }
 0x794   : > { %v1540_v5 = vmul.f32 0.5, %v1533_v56  ;;  %2634 = vtanh.f32 %v1537_v34  ;;  %v1580_v50 = vunpack.c.h.bf16 %v2131_v4  ;;  %v1579_v6 = vunpack.c.l.bf16 %v2131_v4 }
 0x795   : > { %2636 = vtanh.f32 %v1539_v2  ;;  %v1583_v11 = vunpack.c.l.bf16 %v2133_v39 }
 0x796   : > { %2638 = vtanh.f32 %v1531_v54  ;;  %v1584_v54 = vunpack.c.h.bf16 %v2133_v39 }
 0x797   : > { %2640 = vtanh.f32 %v1540_v5 }
 0x798   : > { %2642 = vtanh.f32 %v1535_v7 }
 0x799   : > { %2644 = vtanh.f32 %v1538_v43 }
 0x79a   : > { %2646 = vtanh.f32 %v1541_v37 }
 0x79d   : > { %v2633_v15 = vpop.eup %2632 }
 0x79e   : > { %v1548_v17 = vadd.f32 1.0, %v2633_v15  ;;  %v2635_v18 = vpop.eup %2634 }
 0x79f   : > { %v2637_v22 = vpop.eup %2636  ;;  %v1549_v24 = vadd.f32 1.0, %v2635_v18 }
 0x7a0   : > { %v1554_v23 = vmul.f32 0.5, %v1548_v17  ;;  %v2639_v25 = vpop.eup %2638  ;;  %v1551_v27 = vadd.f32 1.0, %v2637_v22 }
 0x7a1   : > { %v2641_v16 = vpop.eup %2640  ;;  %v1555_v28 = vmul.f32 0.5, %v1549_v24 }
 0x7a2   : > { %v1564_v20 = vmul.f32 %v2639_v25, %v1554_v23  ;;  %v1557_v26 = vmul.f32 0.5, %v1551_v27  ;;  %v1552_v19 = vadd.f32 1.0, %v2641_v16  ;;  %v2643_v29 = vpop.eup %2642 }
 0x7a3   : > { %v1562_v31 = vmul.f32 %v1555_v28, %v3635_v35  ;;  %v2645_v48 = vpop.eup %2644 }
 0x7a4   : > { %v1558_v21 = vmul.f32 0.5, %v1552_v19  ;;  %v1565_v33 = vmul.f32 %v2643_v29, %v1557_v26  ;;  %v2647_v8 = vpop.eup %2646  ;;  %v1550_v49 = vadd.f32 1.0, %v2645_v48 }
 0x7a5   : > { %v3679_v41 = vadd.f32 %v1564_v20, %v1562_v31  ;;  %v1553_v42 = vadd.f32 1.0, %v2647_v8 }
 0x7a6   : > { %v1563_v44 = vmul.f32 %v1558_v21, %v3639_v40  ;;  %v1556_v30 = vmul.f32 0.5, %v1550_v49 }
 0x7a7   : > { %2648 = vtanh.f32 %v3679_v41  ;;  %v1559_v61 = vmul.f32 0.5, %v1553_v42 }
 0x7a8   : > { %v3683_v59 = vadd.f32 %v1565_v33, %v1563_v44 }
 0x7aa   : > { %2650 = vtanh.f32 %v3683_v59 }
 0x7b1   : > { %v2649_v35 = vpop.eup %2648 }
 0x7b2   : > { %v1570_v14 = vmul.f32 %v2649_v35, %v1556_v30 }
 0x7b4   : > { %v2651_v13 = vpop.eup %2650 }
 0x7b5   : > { %v1571_v3 = vmul.f32 %v2651_v13, %v1559_v61 }
 0x7b7   : > { %v1585_v40 = vpack.c.bf16 %v1571_v3, %v1570_v14 }
 0x7b9   : > { %1619 = vmatmul.mubr.bf16.vlgmr.msra.gmra.mrb[28].mxu0 %v1585_v40  ;;  %1662 = vmatmul.mubr.bf16.vlgmr.msra.gmra.mrb[28].mxu1 %v1585_v40 }
 0x88c   : > { %v1620_v58 = vpop.f32.mrb[28].mxu0  ;;  %v1663_v63 = vpop.f32.mrb[28].mxu1 }
 0x88d   : > { %v1672_v0 = vadd.f32 %v1620_v58, %v1577_v46  ;;  %v1622_v36 = vpop.f32.mrb[29].mxu0  ;;  %v1665_v38 = vpop.f32.mrb[29].mxu1  ;;  %v1674_v12 = vadd.f32 %v1663_v63, %v1579_v6  ;;  %v1726_v46 = vld [vmem:[#allocation9 + $0x10] sm:$0xff] (!%p2134_p12)  ;;  %v1728_v58 = vld [vmem:[#allocation9 + $0x20] sm:$0xff] (!%p2134_p12)  ;;  %v1729_v63 = vld [vmem:[#allocation9 + $0x28] sm:$0xff] (!%p2134_p12) }
 0x88e   : > { %v1673_v51 = vadd.f32 %v1622_v36, %v1578_v60  ;;  %v1624_v57 = vpop.f32.mrb[30].mxu0  ;;  %v1667_v32 = vpop.f32.mrb[30].mxu1  ;;  %v1675_v2 = vadd.f32 %v1665_v38, %v1580_v50  ;;  %v1727_v60 = vld [vmem:[#allocation9 + $0x18] sm:$0xff] (!%p2134_p12)  ;;  %v1822_v36 = vld [vmem:[#allocation10] sm:$0xff] (!%p2134_p12)  ;;  %v1823_v50 = vld [vmem:[#allocation10 + $0x8] sm:$0xff] (!%p2134_p12) }
 0x88f   : > { %v1680_v10 = vmul.f32 0.5, %v1672_v0  ;;  %v1676_v52 = vadd.f32 %v1624_v57, %v1581_v62  ;;  %v1626_v47 = vpop.f32.mrb[31].mxu0  ;;  %v1669_v34 = vpop.f32.mrb[31].mxu1  ;;  %v1678_v15 = vadd.f32 %v1667_v32, %v1583_v11  ;;  %v1682_v17 = vmul.f32 0.5, %v1674_v12  ;;  %v1730_v0 = vld [vmem:[#allocation9 + $0x30] sm:$0xff] (!%p2134_p12)  ;;  %v1731_v38 = vld [vmem:[#allocation9 + $0x38] sm:$0xff] (!%p2134_p12) }
 0x890   : > { %v1681_v56 = vmul.f32 0.5, %v1673_v51  ;;  %v1677_v53 = vadd.f32 %v1626_v47, %v1582_v55  ;;  %v1679_v9 = vadd.f32 %v1669_v34, %v1584_v54  ;;  %v2255_v62 = vpack.c.bf16 (!%p2134_p12), %v1727_v60, %v1726_v46  ;;  %v1824_v51 = vld [vmem:[#allocation10 + $0x10] sm:$0xff] (!%p2134_p12)  ;;  %v1825_v57 = vld [vmem:[#allocation10 + $0x18] sm:$0xff] (!%p2134_p12)  ;;  %v1732_v34 = vld [vmem:[#allocation9 + $0x40] sm:$0xff] (!%p2134_p12) }
 0x891   : > { %2652 = vtanh.f32 %v1680_v10  ;;  %v1683_v5 = vmul.f32 0.5, %v1676_v52  ;;  %v1685_v22 = vmul.f32 0.5, %v1678_v15  ;;  %v2259_v55 = vpack.c.bf16 (!%p2134_p12), %v1729_v63, %v1728_v58  ;;  %v1826_v10 = vld [vmem:[#allocation10 + $0x20] sm:$0xff] (!%p2134_p12)  ;;  %v1827_v52 = vld [vmem:[#allocation10 + $0x28] sm:$0xff] (!%p2134_p12)  ;;  %v1828_v54 = vld [vmem:[#allocation10 + $0x30] sm:$0xff] (!%p2134_p12) }
 0x892   : > { %v1684_v7 = vmul.f32 0.5, %v1677_v53  ;;  %2654 = vtanh.f32 %v1681_v56  ;;  %v2283_v39 = vpack.c.bf16 (!%p2134_p12), %v1823_v50, %v1822_v36  ;;  %v2287_v32 = vpack.c.bf16 (!%p2134_p12), %v1825_v57, %v1824_v51  ;;  %v1733_v56 = vld [vmem:[#allocation9 + $0x48] sm:$0xff] (!%p2134_p12)  ;;  %v1734_v6 = vld [vmem:[#allocation9 + $0x50] sm:$0xff] (!%p2134_p12)  ;;  %v1830_v11 = vld [vmem:[#allocation10 + $0x40] sm:$0xff] (!%p2134_p12) }
 0x893   : > { %2656 = vtanh.f32 %v1683_v5  ;;  %v2263_v47 = vpack.c.bf16 (!%p2134_p12), %v1731_v38, %v1730_v0  ;;  %v2291_v53 = vpack.c.bf16 (!%p2134_p12), %v1827_v52, %v1826_v10  ;;  %v2267_v5 = vpack.c.bf16 (!%p2134_p12), %v1733_v56, %v1732_v34  ;;  %v1831_v12 = vld [vmem:[#allocation10 + $0x48] sm:$0xff] (!%p2134_p12) }
 0x894   : > { %2658 = vtanh.f32 %v1675_v2  ;;  %2284 = vmatprep.subr.bf16.mxu1 (!%p2134_p12), %v2283_v39  ;;  %v1829_v2 = vld [vmem:[#allocation10 + $0x38] sm:$0xff] (!%p2134_p12) }
 0x895   : > { %2660 = vtanh.f32 %v1684_v7  ;;  %2286 = vmatpush3.bf16.msra.mxu1 (!%p2134_p12), %v2283_v39  ;;  %v1735_v7 = vld [vmem:[#allocation9 + $0x58] sm:$0xff] (!%p2134_p12) }
 0x896   : > { %2662 = vtanh.f32 %v1679_v9  ;;  %2288 = vmatprep.subr.bf16.mxu1 (!%p2134_p12), %v2287_v32  ;;  %v2295_v9 = vpack.c.bf16 (!%p2134_p12), %v1829_v2, %v1828_v54  ;;  %v2271_v15 = vpack.c.bf16 (!%p2134_p12), %v1735_v7, %v1734_v6 }
 0x897   : > { %2664 = vtanh.f32 %v1682_v17  ;;  %v1736_v17 = vld [vmem:[#allocation9 + $0x60] sm:$0xff] (!%p2134_p12) }
 0x898   : > { %2666 = vtanh.f32 %v1685_v22  ;;  %v1833_v22 = vld [vmem:[#allocation10 + $0x58] sm:$0xff] (!%p2134_p12) }
 0x899   : > { %2290 = vmatpush3.bf16.msra.mxu1 (!%p2134_p12), %v2287_v32 }
 0x89a   : > { %2292 = vmatprep.subr.bf16.mxu1 (!%p2134_p12), %v2291_v53 }
 0x89b   : > { %v2653_v43 = vpop.eup %2652 }
 0x89c   : > { %v1692_v18 = vadd.f32 1.0, %v2653_v43  ;;  %v2655_v37 = vpop.eup %2654  ;;  %v1737_v43 = vld [vmem:[#allocation9 + $0x68] sm:$0xff] (!%p2134_p12) }
 0x89d   : > { %v2657_v23 = vpop.eup %2656  ;;  %v1693_v25 = vadd.f32 1.0, %v2655_v37  ;;  %2294 = vmatpush3.bf16.msra.mxu1 (!%p2134_p12), %v2291_v53  ;;  %v1832_v37 = vld [vmem:[#allocation10 + $0x50] sm:$0xff] (!%p2134_p12) }
 0x89e   : > { %v1698_v24 = vmul.f32 0.5, %v1692_v18  ;;  %v2659_v27 = vpop.eup %2658  ;;  %v1695_v16 = vadd.f32 1.0, %v2657_v23  ;;  %2296 = vmatprep.subr.bf16.mxu1 (!%p2134_p12), %v2295_v9  ;;  %v2299_v18 = vpack.c.bf16 (!%p2134_p12), %v1831_v12, %v1830_v11  ;;  %v2275_v23 = vpack.c.bf16 (!%p2134_p12), %v1737_v43, %v1736_v17 }
 0x89f   : > { %v2661_v28 = vpop.eup %2660  ;;  %v1699_v20 = vmul.f32 0.5, %v1693_v25  ;;  %v1739_v25 = vld [vmem:[#allocation9 + $0x78] sm:$0xff] (!%p2134_p12) }
 0x8a0   : > { %v1708_v26 = vmul.f32 %v2659_v27, %v1698_v24  ;;  %v1701_v19 = vmul.f32 0.5, %v1695_v16  ;;  %v1696_v29 = vadd.f32 1.0, %v2661_v28  ;;  %v2663_v31 = vpop.eup %2662  ;;  %v1738_v24 = vld [vmem:[#allocation9 + $0x70] sm:$0xff] (!%p2134_p12)  ;;  %v2303_v27 = vpack.c.bf16 (!%p2134_p12), %v1833_v22, %v1832_v37  ;;  %v1834_v16 = vld [vmem:[#allocation10 + $0x60] sm:$0xff] (!%p2134_p12)  ;;  %v1835_v28 = vld [vmem:[#allocation10 + $0x68] sm:$0xff] (!%p2134_p12) }
 0x8a1   : > { %v1706_v21 = vmul.f32 %v1699_v20, %v3679_v41  ;;  %v2665_v42 = vpop.eup %2664  ;;  %2298 = vmatpush3.bf16.msra.mxu1 (!%p2134_p12), %v2295_v9  ;;  %v2279_v20 = vpack.c.bf16 (!%p2134_p12), %v1739_v25, %v1738_v24 }
 0x8a2   : > { %v1702_v33 = vmul.f32 0.5, %v1696_v29  ;;  %v1709_v44 = vmul.f32 %v2663_v31, %v1701_v19  ;;  %v2667_v35 = vpop.eup %2666  ;;  %v1694_v30 = vadd.f32 1.0, %v2665_v42  ;;  %2300 = vmatprep.subr.bf16.mxu1 (!%p2134_p12), %v2299_v18  ;;  %v1836_v19 = vld [vmem:[#allocation10 + $0x70] sm:$0xff] (!%p2134_p12)  ;;  %v1837_v29 = vld [vmem:[#allocation10 + $0x78] sm:$0xff] (!%p2134_p12) }
 0x8a3   : > { %v1710_v48 = vadd.f32 %v1708_v26, %v1706_v21  ;;  %v1697_v61 = vadd.f32 1.0, %v2667_v35  ;;  %v2307_v26 = vpack.c.bf16 (!%p2134_p12), %v1835_v28, %v1834_v16  ;;  %v2311_v31 = vpack.c.bf16 (!%p2134_p12), %v1837_v29, %v1836_v19  ;;  %v2135_v21 = vld [vmem:[%s3780_s3] ss:$0 sm:$0xff] (!%p2134_p12) }
 0x8a4   : > { %v1707_v8 = vmul.f32 %v1702_v33, %v3683_v59  ;;  %v1700_v13 = vmul.f32 0.5, %v1694_v30  ;;  %v1724_v59 = vld [vmem:[#allocation9] sm:$0xff] (!%p2134_p12) }
 0x8a5   : > { %2668 = vtanh.f32 %v1710_v48  ;;  %1718 = vst [vmem:[#allocation3] sm:$0xff] %v1710_v48  ;;  %v1703_v40 = vmul.f32 0.5, %v1697_v61  ;;  %v2251_v4 = vpack.c.bf16 (!%p2134_p12), %v1725_v1, %v1724_v59  ;;  %2302 = vmatpush3.bf16.msra.mxu1 (!%p2134_p12), %v2299_v18 }
 0x8a6   : > { %v1711_v49 = vadd.f32 %v1709_v44, %v1707_v8  ;;  %2304 = vmatprep.subr.bf16.mxu1 (!%p2134_p12), %v2303_v27 }
 0x8a7   : > { %2252 = vmatprep.subr.bf16.mxu0 (!%p2134_p12), %v2251_v4 }
 0x8a8   : > { %2670 = vtanh.f32 %v1711_v49  ;;  %1719 = vst [vmem:[#allocation3 + $0x8] sm:$0xff] %v1711_v49  ;;  %2254 = vmatpush3.bf16.msra.mxu0 (!%p2134_p12), %v2251_v4  ;;  %v2136_v49 = vld [vmem:[%s3823_s9] ss:$0 sm:$0xff] (!%p2134_p12) }
 0x8a9   : > { %2256 = vmatprep.subr.bf16.mxu0 (!%p2134_p12), %v2255_v62  ;;  %2306 = vmatpush3.bf16.msra.mxu1 (!%p2134_p12), %v2303_v27 }
 0x8aa   : > { %2308 = vmatprep.subr.bf16.mxu1 (!%p2134_p12), %v2307_v26 }
 0x8ac   : > { %2258 = vmatpush3.bf16.msra.mxu0 (!%p2134_p12), %v2255_v62 }
 0x8ad   : > { %2260 = vmatprep.subr.bf16.mxu0 (!%p2134_p12), %v2259_v55  ;;  %2310 = vmatpush3.bf16.msra.mxu1 (!%p2134_p12), %v2307_v26 }
 0x8ae   : > { %2312 = vmatprep.subr.bf16.mxu1 (!%p2134_p12), %v2311_v31 }
 0x8af   : > { %v2669_v14 = vpop.eup %2668  ;;  %1723 = sbr.rel (%p2134_p12) target bundleno = 2679 (0xa77), region = 68 }
 0x8b0   : > { %v1714_v3 = vmul.f32 %v2669_v14, %v1700_v13  ;;  %2262 = vmatpush3.bf16.msra.mxu0 (!%p2134_p12), %v2259_v55 }
 0x8b1   : > { %2264 = vmatprep.subr.bf16.mxu0 (!%p2134_p12), %v2263_v47  ;;  %2314 = vmatpush3.bf16.msra.mxu1 (!%p2134_p12), %v2311_v31 }
 0x8b2   : > { %v2671_v45 = vpop.eup %2670  ;;  %1716 = vst [vmem:[#allocation2] sm:$0xff] %v1714_v3  ;;  %2213 = vmatprep.mubr.f32.mxu0 (!%p2134_p12), %v1714_v3 }
 0x8b3   : > { %v3692_v41 = vmul.f32 %v2671_v45, %v1703_v40 }
 0x8b4   : > { %2266 = vmatpush3.bf16.msra.mxu0 (!%p2134_p12), %v2263_v47 }
 0x8b5   : > { %1717 = vst [vmem:[#allocation2 + $0x8] sm:$0xff] %v3692_v41  ;;  %2268 = vmatprep.subr.bf16.mxu0 (!%p2134_p12), %v2267_v5 }
 0x8b8   : > { %2270 = vmatpush3.bf16.msra.mxu0 %v2267_v5 }
 0x8b9   : > { %2272 = vmatprep.subr.bf16.mxu0 %v2271_v15 }
 0x8bc   : > { %2274 = vmatpush3.bf16.msra.mxu0 %v2271_v15 }
 0x8bd   : > { %2276 = vmatprep.subr.bf16.mxu0 %v2275_v23 }
 0x8c0   : > { %2278 = vmatpush3.bf16.msra.mxu0 %v2275_v23 }
 0x8c1   : > { %2280 = vmatprep.subr.bf16.mxu0 %v2279_v20 }
 0x8c4   : > { %2282 = vmatpush3.bf16.msra.mxu0 %v2279_v20 }
 0x8c7   : > { %2214 = vmatmul.mubr.f32.vlgmr.msra.gmra.mrb[0].mxu0 %v3692_v41 }
 0x99a   : > { %v2215_v33 = vpop.f32.mrb[0].mxu0 }
 0x99b   : > { %v1813_v44 = vpop.f32.mrb[1].mxu0  ;;  %v1819_v8 = vadd.f32 %v2215_v33, %v2135_v21 }
 0x99c   : > { %v1814_v48 = vadd.f32 %v2135_v21, %v1813_v44 }
 0x99e   : > { %2248 = vmatprep.mubr.f32.mxu1 %v1814_v48 }
 0x99f   : > { %2249 = vmatmul.mubr.f32.vlgmr.msra.gmra.mrb[0].mxu1 %v1819_v8 }
 0xa72   : > { %v2250_v42 = vpop.f32.mrb[0].mxu1 }
 0xa73   : > { %v1917_v35 = vadd.f32 %v2250_v42, %v2136_v49  ;;  %v1911_v30 = vpop.f32.mrb[1].mxu1 }
 0xa74   : > { %v1912_v61 = vadd.f32 %v2136_v49, %v1911_v30 }
 0xa75   : > { %1921 = vst [vmem:[%s3201_s1 + $0x8] sm:$0xff] %v1917_v35 }
 0xa76   : > { %1920 = vst [vmem:[%s3201_s1] sm:$0xff] %v1912_v61 }
 0xa77 PF: > { %s3824_s16 = sld [smem:[#allocation22_spill]]  ;;  %s3825_s21 = sld [smem:[#allocation25_spill]] }
 0xa78   : > { %s3826_s6 = sld [smem:[#allocation31_spill]]  ;;  %s1936_s10 = sshll.u32 %s3201_s1, 4  ;;  %s3712_s10 = int_to_ptr.vmem [resolvable:$true] %s1936_s10 }
 0xa79   : > { %s3716_s5 = scalar_lea.sflag [#allocation6], %s354_s14  ;;  %s2788_s24 = scalar_lea.vmem %s3712_s10, 256 }
 0xa7a   : > { %p2789_p5 = scmp.ne.s32.totalorder %s3712_s10, %s2788_s24  ;;  %s2935_s11 = smov [#allocation12]  }
 0xa7b   : > { %s2792_s28 = sshll.u32 %s2935_s11, 4  ;;  %s2793_s28 = int_to_ptr.vmem [resolvable:$false] %s2792_s28 }
 0xa7c   : > { %s2794_s18 = scalar_lea.vmem %s2793_s28, 512  ;;  %p2795_p1 = scmp.lt.s32.totalorder %s3712_s10, %s2793_s28 }
 0xa7d   : > { %s2144_s20 = sshll.u32 %s3824_s16, 8  ;;  %p3827_p10 = scmp.ne.s32.totalorder %s3825_s21, 0 }
 0xa7e   : > { %s3709_s12 = scalar_lea.hbm %s3826_s6, %s2144_s20  ;;  %p2796_p2 = scmp.lt.s32.totalorder %s2794_s18, %s2788_s24 }
 0xa7f   : > { %p2790_p13 = pnand %p2789_p5, %p3827_p10 }
 0xa80   : > { %p2797_p8 = por %p2796_p2, %p2795_p1 }
 0xa81   : > { %p2791_p0 = pneg %p2790_p13 }
 0xa83   : > { %p2798_p4 = pnand %p2797_p8, %p2791_p0 }
 0xa85   : > { %2801 = shalt.err (!%p2798_p4)
}
 0xa86   : > { %s2802_s14 = scalar_lea.hbm %s3709_s12, 256  ;;  %s2806_s27 = scalar_lea.hbm %s3826_s6, 512 }
 0xa87   : > { %p2803_p9 = scmp.ne.s32.totalorder %s3709_s12, %s2802_s14  ;;  %p2807_p3 = scmp.lt.u32.totalorder %s3709_s12, %s3826_s6 }
 0xa88   : > { %p2808_p7 = scmp.lt.u32.totalorder %s2806_s27, %s2802_s14  ;;  %p2810_p5 = scmp.lt.u32.totalorder %s2802_s14, %s3709_s12 }
 0xa89   : > { %p2804_p11 = pnand %p2803_p9, %p3827_p10 }
 0xa8a   : > { %p2809_p12 = por %p2808_p7, %p2807_p3 }
 0xa8b   : > { %p2805_p6 = pneg %p2804_p11 }
 0xa8c   : > { %p2811_p13 = por %p2810_p5, %p2809_p12 }
 0xa8e   : > { %p2812_p0 = pnand %p2811_p13, %p2805_p6 }
 0xa90   : > { %2815 = shalt.err (!%p2812_p0)
}
 0xa91   : > { %s2936_s19 = smov 128   ;;  %s2937_s9 = smov 8  }
 0xa92   : > { %2336 = dma.vmem_to_hbm [thread:$0]  (%p3827_p10), %s3712_s10, 256, %s3709_s12, %s3716_s5, %s2936_s19, %s2936_s19, %s2937_s9  }
 0xa93 PF: > { %s3828_s16 = sld [smem:[#allocation20_spill]]  ;;  %s3829_s20 = sld [smem:[#allocation28_spill]] }
 0xa94   : > { %p2358_p1 = scmp.ge.s32.totalorder %s2918_s7, 2 }
 0xa99   : > { %s1951_s13 = sand.u32 1, %s3828_s16   ;;  %p3830_p2 = scmp.ne.s32.totalorder %s3829_s20, 0 }
 0xa9a   : > { %s1952_s23 = scalar_lea.sflag [#allocation6], %s1951_s13 }
 0xa9b   : > { %p2349_p8 = pnand %p2358_p1, %p3830_p2 }
 0xa9d   : > { %2873 = dma.done.wait (!%p2349_p8), %s1952_s23, 256  }
 0xa9e   : > { %2875 = vsyncadd (!%p2349_p8), %s1952_s23, 4294967040  ;;  %s24_s7 = sadd.s32 1, %s2918_s7   ;;  %s3831_s24 = sld [smem:[#allocation21_spill]] }
 0xa9f   : > { %p21_p4 = scmp.ge.s32.totalorder %s24_s7, 6   ;;  %s3832_s23 = sld [smem:[#allocation26_spill]] }
 0xaa0   : > { %s3833_s12 = sld [smem:[#allocation27_spill]]  ;;  %s3834_s10 = sld [smem:[#allocation23_spill]] }
 0xaa1   : > { %s3835_s5 = sld [smem:[#allocation24_spill]]  ;;  %s3836_s21 = smov %s2882_s22 }
 0xaa2   : > { %s3841_s27 = smov %s2910_s29  ;;  %s3842_s28 = smov %s2914_s30 }
 0xaa3   :  { %23 = sbr.rel (!%p21_p4) target bundleno = 15 (0xf), region = 121 }
 0xaa4   : > { %s3837_s22 = smov %s3831_s24  ;;  %s3838_s24 = smov %s2894_s25 }
 0xaa5   : > { %s3839_s25 = smov %s2898_s26 }
 0xaa6   : > { %s3840_s26 = smov %s3833_s12  ;;  %s3843_s29 = smov %s3834_s10 }
 0xaa7   : > { %s3844_s30 = smov %s3835_s5 }
 0xaaa   :  { %1957 = vsyncpa [#allocation5], 1 }
 0xaab   :  { %1959 = vsyncpa [#allocation5 + $0x1], 1 }
 0xaac   :  { %1960 = vsyncpa [#allocation8], 1 }
 0xaad   :  { %1961 = vsyncpa [#allocation11], 1 }
 0xaae   :  { %1962 = vsyncpa [#allocation6], 1 }
 0xaaf   :  { %1964 = vsyncpa [#allocation6 + $0x1], 1 }

</bundles_post_ra>
